<compile_context>
chip_gen: v6e
topology: v6e:2x2x1
jax: 0.10.0
libtpu: 0.0.40
codegen_flags: <defaults>
</compile_context>

<pallas_src>
import numpy as np
import jax
import jax.numpy as jnp
from jax import lax
from jax.experimental import pallas as pl
from jax.experimental.pallas import tpu as pltpu

# ----------------------- module configuration (Up(...)) ----------------------
IN_CH  = 32
OUT_CH = 16
KSIZE  = 4
STRIDE = 2
PAD    = 1

USE_BF16_OPERANDS = False   # see TODO(synk) above
MAX_TM = 1024               # max im2col rows (M) per grid step


# ------------------------- static phase/tap tables ---------------------------
def _phase_info(k, s, p):
    """For each output phase r in [0, s): (kernel taps that contribute, offset d)
    where the contributing input row for output row oh = s*q + r and tap number m
    is  ih = q + d - m  (tap kernel index kh = taps[m])."""
    phases = []
    for r in range(s):
        c = (r + p) % s
        taps = list(range(c, k, s))
        d = (r + p) // s
        phases.append((taps, d))
    return phases


def _halo(phases, q_len, n):
    lo_cands = [m - d for taps, d in phases for m in range(len(taps))] + [0]
    hi_cands = [q_len - 1 + d for _, d in phases] + [n - 1]
    lo = max(0, max(lo_cands))
    hi = max(0, max(hi_cands) - (n - 1))
    return lo, hi


# ------------------------- wrapper-side data packing -------------------------
def _build_im2col(x_pad, n_phase_h, n_phase_w, n_tap_h, n_tap_w,
                  off_h, off_w, HQ, WQ):
    """x_pad: (B, Hp, Wp, C_in) -> (B, S*S, HQ*WQ, n_tap_h*n_tap_w*C_in)."""
    B = x_pad.shape[0]
    c_in = x_pad.shape[-1]
    phase_cols = []
    for rh in range(n_phase_h):
        for rw in range(n_phase_w):
            taps = []
            for mh in range(n_tap_h):
                for mw in range(n_tap_w):
                    oh0 = off_h[rh][mh]
                    ow0 = off_w[rw][mw]
                    taps.append(x_pad[:, oh0:oh0 + HQ, ow0:ow0 + WQ, :])
            phase_cols.append(jnp.concatenate(taps, axis=-1))   # (B,HQ,WQ,K)
    col = jnp.stack(phase_cols, axis=1)                          # (B,S*S,HQ,WQ,K)
    return col.reshape(B, n_phase_h * n_phase_w, HQ * WQ,
                       n_tap_h * n_tap_w * c_in)


def _repack_weight(weight, phases_h, phases_w, n_tap_h, n_tap_w):
    """weight (C_in, C_out, KH, KW) (PyTorch ConvTranspose2d layout) ->
       lane-dense (n_tap_h*n_tap_w*C_in, S*S*C_out).  Missing taps -> zeros."""
    cin, cout = weight.shape[0], weight.shape[1]
    zero = jnp.zeros((cin, cout), weight.dtype)
    phase_mats = []
    for taps_h, _ in phases_h:
        for taps_w, _ in phases_w:
            blocks = []
            for mh in range(n_tap_h):
                for mw in range(n_tap_w):
                    if mh < len(taps_h) and mw < len(taps_w):
                        blocks.append(weight[:, :, taps_h[mh], taps_w[mw]])
                    else:
                        blocks.append(zero)
            phase_mats.append(jnp.concatenate(blocks, axis=0))   # (K, C_out)
    return jnp.concatenate(phase_mats, axis=1)                   # (K, S*S*C_out)


# --------------------------------- kernel ------------------------------------
def _make_kernel(n_phase, c_out):
    def kernel(col_ref, w_ref, b_ref, o_ref):
        # col_ref : (1, n_phase, TM, K)    per-phase fused-tap im2col operands
        # w_ref   : (K, n_phase*C_out)     lane-dense packed weights
        # b_ref   : (1, n_phase*C_out)
        # o_ref   : (1, TM, n_phase*C_out)
        outs = []
        for ph in range(n_phase):                    # static, unrolled
            w_ph = w_ref[:, ph * c_out:(ph + 1) * c_out]          # (K, C_out)
            outs.append(jnp.dot(col_ref[0, ph], w_ph,
                                preferred_element_type=jnp.float32))
        # one lane-concat + one broadcast bias add per grid step
        o_ref[0] = jnp.concatenate(outs, axis=-1) + b_ref[...]
    return kernel


# -------------------------------- wrapper ------------------------------------
def up_forward(x_nchw, weight, bias):
    B, c_in, H, W = x_nchw.shape
    _, c_out, KH, KW = weight.shape
    S, P = STRIDE, PAD
    H_out = (H - 1) * S - 2 * P + KH
    W_out = (W - 1) * S - 2 * P + KW
    if H_out % S != 0 or W_out % S != 0:
        # TODO(synk): ragged phases (H_out % stride != 0) not needed for this config.
        raise NotImplementedError("output size must be a multiple of stride")
    HQ, WQ = H_out // S, W_out // S
    n_phase = S * S

    phases_h = _phase_info(KH, S, P)
    phases_w = _phase_info(KW, S, P)
    n_tap_h = max(len(t) for t, _ in phases_h)
    n_tap_w = max(len(t) for t, _ in phases_w)
    K = n_tap_h * n_tap_w * c_in                 # fused-tap contraction dim

    pad_lo_h, pad_hi_h = _halo(phases_h, HQ, H)
    pad_lo_w, pad_hi_w = _halo(phases_w, WQ, W)
    off_h = [[(d - m + pad_lo_h) if m < len(taps) else 0 for m in range(n_tap_h)]
             for taps, d in phases_h]
    off_w = [[(d - m + pad_lo_w) if m < len(taps) else 0 for m in range(n_tap_w)]
             for taps, d in phases_w]

    compute_dtype = jnp.bfloat16 if USE_BF16_OPERANDS else jnp.float32

    # NCHW -> NHWC (+ zero halo so every tap slice is a static in-bounds slice),
    # then wrapper-side im2col so the kernel body is pure matmul.
    x_nhwc = jnp.transpose(x_nchw, (0, 2, 3, 1)).astype(jnp.float32)
    x_pad = jnp.pad(x_nhwc, ((0, 0), (pad_lo_h, pad_hi_h),
                             (pad_lo_w, pad_hi_w), (0, 0)))
    col = _build_im2col(x_pad, S, S, n_tap_h, n_tap_w, off_h, off_w, HQ, WQ)
    col = col.astype(compute_dtype)                       # (B, S*S, M, K)

    w_packed = _repack_weight(weight.astype(jnp.float32), phases_h, phases_w,
                              n_tap_h, n_tap_w).astype(compute_dtype)  # (K, S*S*C_out)
    b_packed = jnp.tile(bias.astype(jnp.float32),
                        (n_phase,)).reshape(1, n_phase * c_out)        # (1, S*S*C_out)

    # M tiling: whole-image at small sizes, whole-output-row blocks otherwise.
    M = HQ * WQ
    if M <= MAX_TM:
        TM = M
    else:
        rows = max(1, MAX_TM // WQ)
        TM = rows * WQ
        if TM % 8 != 0 or M % TM != 0:
            # TODO(synk): ragged M tiling; fall back to whole-image blocks.
            TM = M

    kernel = _make_kernel(n_phase, c_out)

    out = pl.pallas_call(
        kernel,
        out_shape=jax.ShapeDtypeStruct((B, M, n_phase * c_out), jnp.float32),
        grid=(B, M // TM),
        in_specs=[
            pl.BlockSpec((1, n_phase, TM, K), lambda b, m: (b, 0, m, 0)),
            pl.BlockSpec((K, n_phase * c_out), lambda b, m: (0, 0)),
            pl.BlockSpec((1, n_phase * c_out), lambda b, m: (0, 0)),
        ],
        out_specs=pl.BlockSpec((1, TM, n_phase * c_out), lambda b, m: (b, m, 0)),
        compiler_params=pltpu.CompilerParams(
            dimension_semantics=("parallel", "parallel"),
            vmem_limit_bytes=32 * 1024 * 1024),
    )(col, w_packed, b_packed)

    # (B, [q,p], [rh,rw,c]) -> (B, q, rh, p, rw, c) -> (B, H_out, W_out, C) -> NCHW
    out = out.reshape(B, HQ, WQ, S, S, c_out)
    out = jnp.transpose(out, (0, 1, 3, 2, 4, 5)).reshape(B, H_out, W_out, c_out)
    return jnp.transpose(out, (0, 3, 1, 2))


# ------------------------- pure-JAX reference (check) ------------------------
def up_reference(x_nchw, weight, bias):
    # ConvTranspose2d == conv on the lhs-dilated input with the spatially
    # flipped, (ci,co)-swapped kernel and padding (k-1-p).
    _, _, KH, KW = weight.shape
    w_flip = weight[:, :, ::-1, ::-1]
    w_oihw = jnp.transpose(w_flip, (1, 0, 2, 3))
    pad = ((KH - 1 - PAD, KH - 1 - PAD), (KW - 1 - PAD, KW - 1 - PAD))
    y = lax.conv_general_dilated(
        x_nchw, w_oihw, window_strides=(1, 1), padding=pad,
        lhs_dilation=(STRIDE, STRIDE), rhs_dilation=(1, 1),
        dimension_numbers=('NCHW', 'OIHW', 'NCHW'))
    return y + bias[None, :, None, None]


# ----------------------------------- main ------------------------------------
if __name__ == "__main__":
    key = jax.random.PRNGKey(0)
    kx, kw, kb = jax.random.split(key, 3)

    B, H, W = 2, 16, 16
    x = jax.random.normal(kx, (B, IN_CH, H, W), dtype=jnp.float32)
    fan_in = IN_CH * KSIZE * KSIZE
    bound = 1.0 / np.sqrt(fan_in)
    # PyTorch ConvTranspose2d weight layout: (in_channels, out_channels, kH, kW)
    weight = jax.random.uniform(kw, (IN_CH, OUT_CH, KSIZE, KSIZE), jnp.float32,
                                -bound, bound)
    bias = jax.random.uniform(kb, (OUT_CH,), jnp.float32, -bound, bound)

    fwd = jax.jit(up_forward)
    out = fwd(x, weight, bias)
    jax.block_until_ready(out)

    H_out = (H - 1) * STRIDE - 2 * PAD + KSIZE
    W_out = (W - 1) * STRIDE - 2 * PAD + KSIZE
    assert out.shape == (B, OUT_CH, H_out, W_out) and out.dtype == jnp.float32

    ref = up_reference(x, weight, bias)
    err = float(np.max(np.abs(np.asarray(out) - np.asarray(ref))))
    assert np.allclose(np.asarray(out), np.asarray(ref), atol=1e-4, rtol=1e-4), err
    assert bool(jnp.all(jnp.isfinite(out)))
    print("KERNEL_OK")
</pallas_src>

<mosaic_0001>
module attributes {stable_mosaic.version = 11 : i64} {
  func.func @kernel(%arg0: i32, %arg1: i32, %arg2: memref<1x4x256x128xf32, #tpu.memory_space<vmem>>, %arg3: memref<128x64xf32, #tpu.memory_space<vmem>>, %arg4: memref<1x64xf32, #tpu.memory_space<vmem>>, %arg5: memref<1x256x64xf32, #tpu.memory_space<vmem>>) attributes {dimension_semantics = [#tpu.dimension_semantics<parallel>, #tpu.dimension_semantics<parallel>], iteration_bounds = array<i64: 2, 1>, scalar_prefetch = 0 : i64, scratch_operands = 0 : i64, tpu.core_type = #tpu.core_type<tc>, window_params = [{transform_indices = @transform_0, window_bounds = array<i64: 1, 4, 256, 128>}, {pipeline_mode = #tpu.pipeline_mode<synchronous>, transform_indices = @transform_1, window_bounds = array<i64: 128, 64>}, {pipeline_mode = #tpu.pipeline_mode<synchronous>, transform_indices = @transform_2, window_bounds = array<i64: 1, 64>}, {transform_indices = @transform_3, window_bounds = array<i64: 1, 256, 64>}]} {
    %c0 = arith.constant 0 : index
    %c0_0 = arith.constant 0 : index
    %0 = vector.load %arg3[%c0, %c0_0] : memref<128x64xf32, #tpu.memory_space<vmem>>, vector<128x16xf32>
    %c0_1 = arith.constant 0 : index
    %c0_2 = arith.constant 0 : index
    %c0_3 = arith.constant 0 : index
    %c0_4 = arith.constant 0 : index
    %1 = vector.load %arg2[%c0_1, %c0_2, %c0_3, %c0_4] : memref<1x4x256x128xf32, #tpu.memory_space<vmem>>, vector<1x1x256x128xf32>
    %2 = vector.shape_cast %1 : vector<1x1x256x128xf32> to vector<256x128xf32>
    %cst = arith.constant dense<0.000000e+00> : vector<256x16xf32>
    %3 = tpu.matmul %2, %0, %cst {dimension_numbers = #tpu.dot_dimension_numbers<[1], [0], [0], [1], [0, 0, 1, 1], [], []>} : vector<256x128xf32>, vector<128x16xf32>, vector<256x16xf32> -> vector<256x16xf32>
    %c0_5 = arith.constant 0 : index
    %c16 = arith.constant 16 : index
    %4 = vector.load %arg3[%c0_5, %c16] : memref<128x64xf32, #tpu.memory_space<vmem>>, vector<128x16xf32>
    %c0_6 = arith.constant 0 : index
    %c1 = arith.constant 1 : index
    %c0_7 = arith.constant 0 : index
    %c0_8 = arith.constant 0 : index
    %5 = vector.load %arg2[%c0_6, %c1, %c0_7, %c0_8] : memref<1x4x256x128xf32, #tpu.memory_space<vmem>>, vector<1x1x256x128xf32>
    %6 = vector.shape_cast %5 : vector<1x1x256x128xf32> to vector<256x128xf32>
    %cst_9 = arith.constant dense<0.000000e+00> : vector<256x16xf32>
    %7 = tpu.matmul %6, %4, %cst_9 {dimension_numbers = #tpu.dot_dimension_numbers<[1], [0], [0], [1], [0, 0, 1, 1], [], []>} : vector<256x128xf32>, vector<128x16xf32>, vector<256x16xf32> -> vector<256x16xf32>
    %c0_10 = arith.constant 0 : index
    %c32 = arith.constant 32 : index
    %8 = vector.load %arg3[%c0_10, %c32] : memref<128x64xf32, #tpu.memory_space<vmem>>, vector<128x16xf32>
    %c0_11 = arith.constant 0 : index
    %c2 = arith.constant 2 : index
    %c0_12 = arith.constant 0 : index
    %c0_13 = arith.constant 0 : index
    %9 = vector.load %arg2[%c0_11, %c2, %c0_12, %c0_13] : memref<1x4x256x128xf32, #tpu.memory_space<vmem>>, vector<1x1x256x128xf32>
    %10 = vector.shape_cast %9 : vector<1x1x256x128xf32> to vector<256x128xf32>
    %cst_14 = arith.constant dense<0.000000e+00> : vector<256x16xf32>
    %11 = tpu.matmul %10, %8, %cst_14 {dimension_numbers = #tpu.dot_dimension_numbers<[1], [0], [0], [1], [0, 0, 1, 1], [], []>} : vector<256x128xf32>, vector<128x16xf32>, vector<256x16xf32> -> vector<256x16xf32>
    %c0_15 = arith.constant 0 : index
    %c48 = arith.constant 48 : index
    %12 = vector.load %arg3[%c0_15, %c48] : memref<128x64xf32, #tpu.memory_space<vmem>>, vector<128x16xf32>
    %c0_16 = arith.constant 0 : index
    %c3 = arith.constant 3 : index
    %c0_17 = arith.constant 0 : index
    %c0_18 = arith.constant 0 : index
    %13 = vector.load %arg2[%c0_16, %c3, %c0_17, %c0_18] : memref<1x4x256x128xf32, #tpu.memory_space<vmem>>, vector<1x1x256x128xf32>
    %14 = vector.shape_cast %13 : vector<1x1x256x128xf32> to vector<256x128xf32>
    %cst_19 = arith.constant dense<0.000000e+00> : vector<256x16xf32>
    %15 = tpu.matmul %14, %12, %cst_19 {dimension_numbers = #tpu.dot_dimension_numbers<[1], [0], [0], [1], [0, 0, 1, 1], [], []>} : vector<256x128xf32>, vector<128x16xf32>, vector<256x16xf32> -> vector<256x16xf32>
    %16 = tpu.concatenate %3, %7, %11, %15 in 1 : vector<256x16xf32>, vector<256x16xf32>, vector<256x16xf32>, vector<256x16xf32> -> vector<256x64xf32>
    %c0_20 = arith.constant 0 : index
    %c0_21 = arith.constant 0 : index
    %17 = vector.load %arg4[%c0_20, %c0_21] : memref<1x64xf32, #tpu.memory_space<vmem>>, vector<1x64xf32>
    %18 = vector.broadcast %17 : vector<1x64xf32> to vector<256x64xf32>
    %19 = arith.addf %16, %18 : vector<256x64xf32>
    %c0_22 = arith.constant 0 : index
    %c0_23 = arith.constant 0 : index
    %c0_24 = arith.constant 0 : index
    %20 = vector.load %arg5[%c0_22, %c0_23, %c0_24] : memref<1x256x64xf32, #tpu.memory_space<vmem>>, vector<1x256x64xf32>
    %21 = vector.shape_cast %20 : vector<1x256x64xf32> to vector<256x64xf32>
    %22 = vector.shape_cast %19 : vector<256x64xf32> to vector<1x256x64xf32>
    tpu.vector_store %arg5[%c0_22, %c0_23, %c0_24], %22 {strides = array<i32>} : memref<1x256x64xf32, #tpu.memory_space<vmem>>, vector<1x256x64xf32>,
    return
  }
  func.func @transform_0(%arg0: i32, %arg1: i32) -> (i32, i32, i32, i32) {
    %c0_i32 = arith.constant 0 : i32
    %c0_i32_0 = arith.constant 0 : i32
    %c0_i32_1 = arith.constant 0 : i32
    return %arg0, %c0_i32, %arg1, %c0_i32_0 : i32, i32, i32, i32
  }
  func.func @transform_1(%arg0: i32, %arg1: i32) -> (i32, i32) {
    %c0_i32 = arith.constant 0 : i32
    %c0_i32_0 = arith.constant 0 : i32
    %c0_i32_1 = arith.constant 0 : i32
    return %c0_i32, %c0_i32_0 : i32, i32
  }
  func.func @transform_2(%arg0: i32, %arg1: i32) -> (i32, i32) {
    %c0_i32 = arith.constant 0 : i32
    %c0_i32_0 = arith.constant 0 : i32
    %c0_i32_1 = arith.constant 0 : i32
    return %c0_i32, %c0_i32_0 : i32, i32
  }
  func.func @transform_3(%arg0: i32, %arg1: i32) -> (i32, i32, i32) {
    %c0_i32 = arith.constant 0 : i32
    %c0_i32_0 = arith.constant 0 : i32
    return %arg0, %arg1, %c0_i32 : i32, i32, i32
  }
}

</mosaic_0001>

<bundles_post_ra>
// kernel: tile.8
= control target key start
LH: loop header
LB: loop body
LE: loop exit
PB: predicated region body
PF: predicated region fallthrough
CT: control target
= control target key end

     0   :  { %s22_s0 = inlined_call_operand.vmem [shape: f32[16], index: 0, kind: input, shape index: {}]   ;;  %s23_s1 = inlined_call_operand.vmem [shape: f32[4,16], index: 1, kind: output, shape index: {}]  }
   0x1   :  { %v4_v0 = vld [vmem:[%s22_s0] ss:$0 sm:$0xff] }
   0x2   :  { %5 = vst [vmem:[%s23_s1] sm:$0xf] %v4_v0 }

// kernel: tile.9
= control target key start
LH: loop header
LB: loop body
LE: loop exit
PB: predicated region body
PF: predicated region fallthrough
CT: control target
= control target key end

     0   :  { %vm8_vm0 = vcmask 130048   ;;  %s40_s8 = smov 16   ;;  %s41_s9 = smov 32   ;;  %vm14_vm1 = vcmask 523648   ;;  %vm20_vm2 = vcmask 392448   ;;  %vm26_vm3 = vcmask 261248   ;;  %s58_s0 = inlined_call_operand.vmem [shape: f32[4,16], index: 0, kind: input, shape index: {}]   ;;  %s59_s1 = inlined_call_operand.vmem [shape: f32[1,64], index: 1, kind: output, shape index: {}]  }
   0x1   :  { %v5_v0 = vld [vmem:[%s58_s0] sm:$0xf]  ;;  %s39_s0 = smov 48  }
   0x2   :  { %6 = vst [vmem:[#allocation1] sm:$0xf] %v5_v0 }
   0x9   :  { %v11_v1 = vld [vmem:[#allocation1 + $0x3] sm:$0x1]   ;;  %v23_v2 = vld [vmem:[#allocation1 + $0x1] sm:$0x1]   ;;  %v7_v3 = vld [vmem:[#allocation1] sm:$0x1]  }
   0xa   :  { %12 = vrot.lane.b32.xlu0 %v11_v1, %s39_s0  ;;  %24 = vrot.lane.b32.xlu1 %v23_v2, %s40_s8  ;;  %v17_v4 = vld [vmem:[#allocation1 + $0x2] sm:$0x1]   ;;  %9 = vst.msk [vmem:[#allocation0] sm:$0x1] %vm8_vm0, %v7_v3  }
   0xe   :  { %18 = vrot.lane.b32.xlu0 %v17_v4, %s41_s9 }
  0x7c   :  { %v13_v5 = vpop.permute.xlu0 %12   ;;  %v25_v6 = vpop.permute.xlu1 %24  }
  0x7d   :  { %15 = vst.msk [vmem:[#allocation0] sm:$0x1] %vm14_vm1, %v13_v5  }
  0x80   :  { %v19_v7 = vpop.permute.xlu0 %18  }
  0x81   :  { %21 = vst.msk [vmem:[#allocation0] sm:$0x1] %vm20_vm2, %v19_v7  }
  0x82   :  { %27 = vst.msk [vmem:[#allocation0] sm:$0x1] %vm26_vm3, %v25_v6  }
  0x89   :  { %v32_v8 = vld [vmem:[#allocation0] sm:$0x1] }
  0x8a   :  { %35 = vst [vmem:[%s59_s1] sm:$0x1] %v32_v8 }

// kernel: up_forward.1
= control target key start
LH: loop header
LB: loop body
LE: loop exit
PB: predicated region body
PF: predicated region fallthrough
CT: control target
= control target key end

     0   :  { %s2761_s12 = smov 0   ;;  %s2763_s13 = smov 0   ;;  %s3681_s0 = inlined_call_operand.vmem [shape: f32[2,4,256,128], index: 0, kind: input, shape index: {}]   ;;  %s3682_s1 = inlined_call_operand.vmem [shape: f32[128,64], index: 1, kind: input, shape index: {}]   ;;  %s3683_s2 = inlined_call_operand.vmem [shape: f32[1,64], index: 2, kind: input, shape index: {}]   ;;  %s3684_s3 = inlined_call_operand.vmem [shape: f32[2,256,64], index: 3, kind: output, shape index: {}]  }
   0x1   :  { %s2765_s14 = smov 0  }
   0x2 LB: > { %s25_s15 = sadd.s32 1, %s2729_s13  ;;  %p2063_p0 = scmp.ge.s32.totalorder %s2733_s14, 1  ;;  %s2733_s14 = sphi %s2765_s14, %s13_s14   ;;  %s2729_s13 = sphi %s2763_s13, %s3686_s13   ;;  %s2725_s12 = sphi %s2761_s12, %s3685_s12  }
   0x3   : > { %p27_p1 = scmp.ge.s32.totalorder %s25_s15, 2  ;;  %p158_p2 = scmp.lt.s32.totalorder %s2733_s14, 3 }
   0x5   : > { %s3688_s15 = smov (%p27_p1, %s25_s15), 0  ;;  %p159_p3 = pnand %p2063_p0, %p158_p2 }
   0x6   : > { %s2735_s20 = smov (!%p159_p3), 112   ;;  %p191_p4 = scmp.lt.s32.totalorder (!%p159_p3), %s2725_s12, 1 }
   0x7   : > { %162 = sbr.rel (%p159_p3) target bundleno = 720 (0x2d0), region = 32  ;;  %s2736_s4 = smov (!%p159_p3), 96  }
   0x8   : > { %s2737_s5 = smov (!%p159_p3), 80   ;;  %s2740_s7 = smov (!%p159_p3), 48  }
   0xc   : > { %v2784_v0 = vld [vmem:[%s3682_s1 + $0x78] sm:$0xff]  ;;  %v2789_v1 = vld [vmem:[%s3682_s1 + $0x68] sm:$0xff]  ;;  %v2798_v2 = vld [vmem:[%s3682_s1 + $0x70] sm:$0xff]  ;;  %s3690_s12 = smov (!%p191_p4, %s2725_s12), 1  ;;  %vm1801_vm0 = vcmask 130048   ;;  %vm1834_vm1 = vcmask 261120  }
   0xd   : > { %562 = vrot.lane.b32.xlu0 %v2784_v0, %s2735_s20  ;;  %558 = vrot.lane.b32.xlu1 %v2789_v1, %s2735_s20  ;;  %v2803_v3 = vld [vmem:[%s3682_s1 + $0x60] sm:$0xff]  ;;  %v2815_v4 = vld [vmem:[%s3682_s1 + $0x58] sm:$0xff]  ;;  %s2167_s6 = sshll.u32 %s3690_s12, 10  ;;  %s2168_s8 = sshll.u32 %s3690_s12, 8  ;;  %vm1867_vm2 = vcmask 392192   ;;  %vm1939_vm3 = vcmask 523264  }
   0xe   : > { %2361 = vmatprep.subr.mxu0 %v2784_v0  ;;  %v2820_v5 = vld [vmem:[%s3682_s1 + $0x50] sm:$0xff]  ;;  %v2833_v6 = vld [vmem:[%s3682_s1 + $0x48] sm:$0xff]  ;;  %v2838_v7 = vld [vmem:[%s3682_s1 + $0x40] sm:$0xff]  ;;  %s2854_s9 = scalar_lea.vmem %s3681_s0, %s2167_s6  ;;  %s2739_s6 = smov 32  }
   0xf   : > { %2362 = vmatpush3.msra.mxu0 %v2784_v0  ;;  %v2859_v8 = vld [vmem:[%s3682_s1 + $0x38] sm:$0xff]  ;;  %v2864_v9 = vld [vmem:[%s3682_s1 + $0x30] sm:$0xff]  ;;  %v226_v10 = vld [vmem:[%s2854_s9] sm:$0xff]  ;;  %s3502_s17 = scalar_lea.vmem %s3684_s3, %s2168_s8 }
  0x10   : > { %2363 = vmatprep.subr.mxu0 %v2798_v2  ;;  %2393 = vmatprep.mubr.f32.mxu0 %v226_v10  ;;  %v2877_v11 = vld [vmem:[%s3682_s1 + $0x28] sm:$0xff]  ;;  %v2882_v12 = vld [vmem:[%s3682_s1 + $0x20] sm:$0xff]  ;;  %v2895_v14 = vld [vmem:[%s3682_s1 + $0x18] sm:$0xff] }
  0x11   : > { %560 = vrot.lane.b32.xlu0 %v2798_v2, %s2735_s20  ;;  %556 = vrot.lane.b32.xlu1 %v2803_v3, %s2735_s20  ;;  %v2068_v13 = vld [vmem:[%s2854_s9 + $0x100] sm:$0xff]  ;;  %v2900_v15 = vld [vmem:[%s3682_s1 + $0x10] sm:$0xff] }
  0x12   : > { %2364 = vmatpush3.msra.mxu0 %v2798_v2  ;;  %2473 = vmatprep.mubr.f32.mxu1 %v2068_v13  ;;  %v2912_v16 = vld [vmem:[%s3682_s1 + $0x8] sm:$0xff]  ;;  %v2917_v17 = vld [vmem:[%s3682_s1] sm:$0xff]  ;;  %v228_v19 = vld [vmem:[%s2854_s9 + $0x10] sm:$0xff] }
  0x13   : > { %2365 = vmatprep.subr.mxu0 %v2789_v1  ;;  %v227_v18 = vld [vmem:[%s2854_s9 + $0x8] sm:$0xff]  ;;  %v229_v20 = vld [vmem:[%s2854_s9 + $0x18] sm:$0xff]  ;;  %v230_v21 = vld [vmem:[%s2854_s9 + $0x20] sm:$0xff] }
  0x14   : > { %2366 = vmatpush3.msra.mxu0 %v2789_v1  ;;  %v231_v22 = vld [vmem:[%s2854_s9 + $0x28] sm:$0xff]  ;;  %v232_v23 = vld [vmem:[%s2854_s9 + $0x30] sm:$0xff]  ;;  %v233_v24 = vld [vmem:[%s2854_s9 + $0x38] sm:$0xff] }
  0x15   : > { %554 = vrot.lane.b32.xlu0 %v2815_v4, %s2735_s20  ;;  %552 = vrot.lane.b32.xlu1 %v2820_v5, %s2735_s20  ;;  %v234_v25 = vld [vmem:[%s2854_s9 + $0x40] sm:$0xff]  ;;  %v235_v26 = vld [vmem:[%s2854_s9 + $0x48] sm:$0xff] }
  0x16   : > { %2367 = vmatprep.subr.mxu0 %v2803_v3  ;;  %v236_v27 = vld [vmem:[%s2854_s9 + $0x50] sm:$0xff]  ;;  %v237_v28 = vld [vmem:[%s2854_s9 + $0x58] sm:$0xff]  ;;  %v238_v29 = vld [vmem:[%s2854_s9 + $0x60] sm:$0xff] }
  0x17   : > { %2368 = vmatpush3.msra.mxu0 %v2803_v3  ;;  %v239_v30 = vld [vmem:[%s2854_s9 + $0x68] sm:$0xff]  ;;  %v240_v31 = vld [vmem:[%s2854_s9 + $0x70] sm:$0xff]  ;;  %v241_v32 = vld [vmem:[%s2854_s9 + $0x78] sm:$0xff] }
  0x18   : > { %2369 = vmatprep.subr.mxu0 %v2815_v4  ;;  %v242_v33 = vld [vmem:[%s2854_s9 + $0x80] sm:$0xff]  ;;  %v243_v34 = vld [vmem:[%s2854_s9 + $0x88] sm:$0xff]  ;;  %v244_v35 = vld [vmem:[%s2854_s9 + $0x90] sm:$0xff] }
  0x19   : > { %550 = vrot.lane.b32.xlu0 %v2833_v6, %s2735_s20  ;;  %548 = vrot.lane.b32.xlu1 %v2838_v7, %s2735_s20  ;;  %v245_v36 = vld [vmem:[%s2854_s9 + $0x98] sm:$0xff]  ;;  %v246_v37 = vld [vmem:[%s2854_s9 + $0xa0] sm:$0xff] }
  0x1a   : > { %2370 = vmatpush3.msra.mxu0 %v2815_v4  ;;  %v247_v38 = vld [vmem:[%s2854_s9 + $0xa8] sm:$0xff]  ;;  %v248_v39 = vld [vmem:[%s2854_s9 + $0xb0] sm:$0xff]  ;;  %v249_v40 = vld [vmem:[%s2854_s9 + $0xb8] sm:$0xff] }
  0x1b   : > { %2371 = vmatprep.subr.mxu0 %v2820_v5  ;;  %v250_v41 = vld [vmem:[%s2854_s9 + $0xc0] sm:$0xff]  ;;  %v251_v42 = vld [vmem:[%s2854_s9 + $0xc8] sm:$0xff]  ;;  %v252_v43 = vld [vmem:[%s2854_s9 + $0xd0] sm:$0xff] }
  0x1c   : > { %2372 = vmatpush3.msra.mxu0 %v2820_v5  ;;  %v253_v44 = vld [vmem:[%s2854_s9 + $0xd8] sm:$0xff]  ;;  %v254_v45 = vld [vmem:[%s2854_s9 + $0xe0] sm:$0xff]  ;;  %v255_v46 = vld [vmem:[%s2854_s9 + $0xe8] sm:$0xff] }
  0x1d   : > { %546 = vrot.lane.b32.xlu0 %v2859_v8, %s2735_s20  ;;  %544 = vrot.lane.b32.xlu1 %v2864_v9, %s2735_s20  ;;  %v256_v47 = vld [vmem:[%s2854_s9 + $0xf0] sm:$0xff]  ;;  %v257_v48 = vld [vmem:[%s2854_s9 + $0xf8] sm:$0xff] }
  0x1e   : > { %2373 = vmatprep.subr.mxu0 %v2833_v6  ;;  %v2100_v49 = vld [vmem:[%s2854_s9 + $0x200] sm:$0xff] }
  0x1f   : > { %2374 = vmatpush3.msra.mxu0 %v2833_v6 }
  0x20   : > { %2375 = vmatprep.subr.mxu0 %v2838_v7 }
  0x21   : > { %542 = vrot.lane.b32.xlu0 %v2877_v11, %s2735_s20  ;;  %540 = vrot.lane.b32.xlu1 %v2882_v12, %s2735_s20 }
  0x22   : > { %2376 = vmatpush3.msra.mxu0 %v2838_v7 }
  0x23   : > { %2377 = vmatprep.subr.mxu0 %v2859_v8 }
  0x24   : > { %2378 = vmatpush3.msra.mxu0 %v2859_v8 }
  0x25   : > { %538 = vrot.lane.b32.xlu0 %v2895_v14, %s2735_s20  ;;  %536 = vrot.lane.b32.xlu1 %v2900_v15, %s2735_s20 }
  0x26   : > { %2379 = vmatprep.subr.mxu0 %v2864_v9 }
  0x27   : > { %2380 = vmatpush3.msra.mxu0 %v2864_v9 }
  0x28   : > { %2381 = vmatprep.subr.mxu0 %v2877_v11 }
  0x29   : > { %534 = vrot.lane.b32.xlu0 %v2912_v16, %s2735_s20  ;;  %532 = vrot.lane.b32.xlu1 %v2917_v17, %s2735_s20  ;;  %s2738_s20 = smov 16  }
  0x2a   : > { %2382 = vmatpush3.msra.mxu0 %v2877_v11 }
  0x2b   : > { %2383 = vmatprep.subr.mxu0 %v2882_v12 }
  0x2c   : > { %2384 = vmatpush3.msra.mxu0 %v2882_v12 }
  0x2d   : > { %868 = vrot.lane.b32.xlu0 %v2784_v0, %s2736_s4  ;;  %2385 = vmatprep.subr.mxu0 %v2895_v14 }
  0x2e   : > { %2386 = vmatpush3.msra.mxu0 %v2895_v14  ;;  %1174 = vrot.lane.b32.xlu1 %v2784_v0, %s2737_s5 }
  0x2f   : > { %2387 = vmatprep.subr.mxu0 %v2900_v15 }
  0x30   : > { %2388 = vmatpush3.msra.mxu0 %v2900_v15 }
  0x31   : > { %866 = vrot.lane.b32.xlu0 %v2798_v2, %s2736_s4  ;;  %2389 = vmatprep.subr.mxu0 %v2912_v16 }
  0x32   : > { %2390 = vmatpush3.msra.mxu0 %v2912_v16  ;;  %1172 = vrot.lane.b32.xlu1 %v2798_v2, %s2737_s5 }
  0x33   : > { %2391 = vmatprep.subr.mxu0 %v2917_v17 }
  0x34   : > { %2392 = vmatpush3.msra.mxu0 %v2917_v17 }
  0x35   : > { %864 = vrot.lane.b32.xlu0 %v2789_v1, %s2736_s4  ;;  %2394 = vmatmul.mubr.f32.vlgmr.msra.gmra.mxu0 %v227_v18 }
  0x36   : > { %2396 = vmatprep.mubr.f32.mxu0 %v228_v19  ;;  %1170 = vrot.lane.b32.xlu1 %v2789_v1, %s2737_s5  ;;  %v2077_v19 = vld [vmem:[%s2854_s9 + $0x148] sm:$0xff] }
  0x39   : > { %862 = vrot.lane.b32.xlu0 %v2803_v3, %s2736_s4  ;;  %2397 = vmatmul.mubr.f32.gmra.mxu0 %v229_v20  ;;  %v2078_v20 = vld [vmem:[%s2854_s9 + $0x150] sm:$0xff] }
  0x3a   : > { %2399 = vmatprep.mubr.f32.mxu0 %v230_v21  ;;  %1168 = vrot.lane.b32.xlu1 %v2803_v3, %s2737_s5  ;;  %v2069_v3 = vld [vmem:[%s2854_s9 + $0x108] sm:$0xff] }
  0x3d   : > { %860 = vrot.lane.b32.xlu0 %v2815_v4, %s2736_s4  ;;  %2400 = vmatmul.mubr.f32.gmra.mxu0 %v231_v22 }
  0x3e   : > { %2402 = vmatprep.mubr.f32.mxu0 %v232_v23  ;;  %1166 = vrot.lane.b32.xlu1 %v2815_v4, %s2737_s5  ;;  %v2070_v4 = vld [vmem:[%s2854_s9 + $0x110] sm:$0xff]  ;;  %v2079_v23 = vld [vmem:[%s2854_s9 + $0x158] sm:$0xff] }
  0x41   : > { %858 = vrot.lane.b32.xlu0 %v2820_v5, %s2736_s4  ;;  %2403 = vmatmul.mubr.f32.gmra.mxu0 %v233_v24  ;;  %v2080_v24 = vld [vmem:[%s2854_s9 + $0x160] sm:$0xff] }
  0x42   : > { %2405 = vmatprep.mubr.f32.mxu0 %v234_v25  ;;  %1164 = vrot.lane.b32.xlu1 %v2820_v5, %s2737_s5 }
  0x45   : > { %856 = vrot.lane.b32.xlu0 %v2833_v6, %s2736_s4  ;;  %2406 = vmatmul.mubr.f32.gmra.mxu0 %v235_v26 }
  0x46   : > { %2408 = vmatprep.mubr.f32.mxu0 %v236_v27  ;;  %1162 = vrot.lane.b32.xlu1 %v2833_v6, %s2737_s5  ;;  %v2081_v27 = vld [vmem:[%s2854_s9 + $0x168] sm:$0xff] }
  0x49   : > { %854 = vrot.lane.b32.xlu0 %v2838_v7, %s2736_s4  ;;  %2409 = vmatmul.mubr.f32.gmra.mxu0 %v237_v28  ;;  %v2082_v28 = vld [vmem:[%s2854_s9 + $0x170] sm:$0xff] }
  0x4a   : > { %2411 = vmatprep.mubr.f32.mxu0 %v238_v29  ;;  %1160 = vrot.lane.b32.xlu1 %v2838_v7, %s2737_s5  ;;  %v2071_v7 = vld [vmem:[%s2854_s9 + $0x118] sm:$0xff] }
  0x4d   : > { %852 = vrot.lane.b32.xlu0 %v2859_v8, %s2736_s4  ;;  %2412 = vmatmul.mubr.f32.gmra.mxu0 %v239_v30 }
  0x4e   : > { %2414 = vmatprep.mubr.f32.mxu0 %v240_v31  ;;  %1158 = vrot.lane.b32.xlu1 %v2859_v8, %s2737_s5  ;;  %v2072_v8 = vld [vmem:[%s2854_s9 + $0x120] sm:$0xff]  ;;  %v2083_v31 = vld [vmem:[%s2854_s9 + $0x178] sm:$0xff] }
  0x51   : > { %850 = vrot.lane.b32.xlu0 %v2864_v9, %s2736_s4  ;;  %2415 = vmatmul.mubr.f32.gmra.mxu0 %v241_v32  ;;  %v2084_v32 = vld [vmem:[%s2854_s9 + $0x180] sm:$0xff] }
  0x52   : > { %2417 = vmatprep.mubr.f32.mxu0 %v242_v33  ;;  %1156 = vrot.lane.b32.xlu1 %v2864_v9, %s2737_s5 }
  0x55   : > { %848 = vrot.lane.b32.xlu0 %v2877_v11, %s2736_s4  ;;  %2418 = vmatmul.mubr.f32.gmra.mxu0 %v243_v34 }
  0x56   : > { %2420 = vmatprep.mubr.f32.mxu0 %v244_v35  ;;  %1154 = vrot.lane.b32.xlu1 %v2877_v11, %s2737_s5  ;;  %v2073_v11 = vld [vmem:[%s2854_s9 + $0x128] sm:$0xff] }
  0x57   : > { %v2085_v35 = vld [vmem:[%s2854_s9 + $0x188] sm:$0xff] }
  0x59   : > { %846 = vrot.lane.b32.xlu0 %v2882_v12, %s2736_s4  ;;  %2421 = vmatmul.mubr.f32.gmra.mxu0 %v245_v36  ;;  %v2086_v36 = vld [vmem:[%s2854_s9 + $0x190] sm:$0xff] }
  0x5a   : > { %2423 = vmatprep.mubr.f32.mxu0 %v246_v37  ;;  %1152 = vrot.lane.b32.xlu1 %v2882_v12, %s2737_s5  ;;  %v2074_v12 = vld [vmem:[%s2854_s9 + $0x130] sm:$0xff] }
  0x5d   : > { %844 = vrot.lane.b32.xlu0 %v2895_v14, %s2736_s4  ;;  %2424 = vmatmul.mubr.f32.gmra.mxu0 %v247_v38 }
  0x5e   : > { %2426 = vmatprep.mubr.f32.mxu0 %v248_v39  ;;  %1150 = vrot.lane.b32.xlu1 %v2895_v14, %s2737_s5  ;;  %v2087_v39 = vld [vmem:[%s2854_s9 + $0x198] sm:$0xff] }
  0x61   : > { %842 = vrot.lane.b32.xlu0 %v2900_v15, %s2736_s4  ;;  %2427 = vmatmul.mubr.f32.gmra.mxu0 %v249_v40  ;;  %v2088_v40 = vld [vmem:[%s2854_s9 + $0x1a0] sm:$0xff] }
  0x62   : > { %2429 = vmatprep.mubr.f32.mxu0 %v250_v41  ;;  %1148 = vrot.lane.b32.xlu1 %v2900_v15, %s2737_s5  ;;  %v2075_v15 = vld [vmem:[%s2854_s9 + $0x138] sm:$0xff] }
  0x65   : > { %840 = vrot.lane.b32.xlu0 %v2912_v16, %s2736_s4  ;;  %2430 = vmatmul.mubr.f32.gmra.mxu0 %v251_v42 }
  0x66   : > { %2432 = vmatprep.mubr.f32.mxu0 %v252_v43  ;;  %1146 = vrot.lane.b32.xlu1 %v2912_v16, %s2737_s5  ;;  %v2076_v16 = vld [vmem:[%s2854_s9 + $0x140] sm:$0xff]  ;;  %v2089_v43 = vld [vmem:[%s2854_s9 + $0x1a8] sm:$0xff] }
  0x69   : > { %838 = vrot.lane.b32.xlu0 %v2917_v17, %s2736_s4  ;;  %2433 = vmatmul.mubr.f32.gmra.mxu0 %v253_v44  ;;  %v2090_v44 = vld [vmem:[%s2854_s9 + $0x1b0] sm:$0xff] }
  0x6a   : > { %2435 = vmatprep.mubr.f32.mxu0 %v254_v45  ;;  %1144 = vrot.lane.b32.xlu1 %v2917_v17, %s2737_s5 }
  0x6d   : > { %2436 = vmatmul.mubr.f32.gmra.mxu0 %v255_v46 }
  0x6e   : > { %2438 = vmatprep.mubr.f32.mxu0 %v256_v47  ;;  %v2091_v47 = vld [vmem:[%s2854_s9 + $0x1b8] sm:$0xff] }
  0x71   : > { %2439 = vmatmul.mubr.f32.gmra.mxu0 %v257_v48  ;;  %v2092_v48 = vld [vmem:[%s2854_s9 + $0x1c0] sm:$0xff] }
  0x72   : > { %2553 = vmatprep.mubr.f32.mxu0 %v2100_v49 }
  0x7f   : > { %v563_v50 = vpop.permute.xlu0 %562  ;;  %v559_v51 = vpop.permute.xlu1 %558 }
  0x80   : > { %2441 = vmatprep.subr.mxu1 %v563_v50 }
  0x81   : > { %2442 = vmatpush3.msra.mxu1 %v563_v50 }
  0x83   : > { %v561_v52 = vpop.permute.xlu0 %560  ;;  %v557_v53 = vpop.permute.xlu1 %556 }
  0x84   : > { %2443 = vmatprep.subr.mxu1 %v561_v52 }
  0x85   : > { %2444 = vmatpush3.msra.mxu1 %v561_v52  ;;  %v2094_v52 = vld [vmem:[%s2854_s9 + $0x1d0] sm:$0xff] }
  0x86   : > { %2445 = vmatprep.subr.mxu1 %v559_v51 }
  0x87   : > { %2446 = vmatpush3.msra.mxu1 %v559_v51  ;;  %v555_v54 = vpop.permute.xlu0 %554  ;;  %v553_v55 = vpop.permute.xlu1 %552  ;;  %v2093_v51 = vld [vmem:[%s2854_s9 + $0x1c8] sm:$0xff] }
  0x88   : > { %2447 = vmatprep.subr.mxu1 %v557_v53 }
  0x89   : > { %2448 = vmatpush3.msra.mxu1 %v557_v53 }
  0x8a   : > { %2449 = vmatprep.subr.mxu1 %v555_v54 }
  0x8b   : > { %2450 = vmatpush3.msra.mxu1 %v555_v54  ;;  %v551_v56 = vpop.permute.xlu0 %550  ;;  %v549_v57 = vpop.permute.xlu1 %548 }
  0x8c   : > { %2451 = vmatprep.subr.mxu1 %v553_v55 }
  0x8d   : > { %2452 = vmatpush3.msra.mxu1 %v553_v55  ;;  %v2095_v55 = vld [vmem:[%s2854_s9 + $0x1d8] sm:$0xff] }
  0x8e   : > { %2453 = vmatprep.subr.mxu1 %v551_v56 }
  0x8f   : > { %2454 = vmatpush3.msra.mxu1 %v551_v56  ;;  %v547_v58 = vpop.permute.xlu0 %546  ;;  %v545_v59 = vpop.permute.xlu1 %544  ;;  %v2096_v56 = vld [vmem:[%s2854_s9 + $0x1e0] sm:$0xff] }
  0x90   : > { %2455 = vmatprep.subr.mxu1 %v549_v57 }
  0x91   : > { %2456 = vmatpush3.msra.mxu1 %v549_v57 }
  0x92   : > { %2457 = vmatprep.subr.mxu1 %v547_v58 }
  0x93   : > { %2458 = vmatpush3.msra.mxu1 %v547_v58  ;;  %v543_v60 = vpop.permute.xlu0 %542  ;;  %v541_v61 = vpop.permute.xlu1 %540 }
  0x94   : > { %2459 = vmatprep.subr.mxu1 %v545_v59 }
  0x95   : > { %2460 = vmatpush3.msra.mxu1 %v545_v59  ;;  %v2097_v59 = vld [vmem:[%s2854_s9 + $0x1e8] sm:$0xff] }
  0x96   : > { %2461 = vmatprep.subr.mxu1 %v543_v60 }
  0x97   : > { %2462 = vmatpush3.msra.mxu1 %v543_v60  ;;  %v539_v62 = vpop.permute.xlu0 %538  ;;  %v537_v63 = vpop.permute.xlu1 %536  ;;  %v2098_v60 = vld [vmem:[%s2854_s9 + $0x1f0] sm:$0xff] }
  0x98   : > { %2463 = vmatprep.subr.mxu1 %v541_v61 }
  0x99   : > { %2464 = vmatpush3.msra.mxu1 %v541_v61 }
  0x9a   : > { %2465 = vmatprep.subr.mxu1 %v539_v62 }
  0x9b   : > { %2466 = vmatpush3.msra.mxu1 %v539_v62  ;;  %v535_v0 = vpop.permute.xlu0 %534  ;;  %v533_v1 = vpop.permute.xlu1 %532 }
  0x9c   : > { %2467 = vmatprep.subr.mxu1 %v537_v63 }
  0x9d   : > { %2468 = vmatpush3.msra.mxu1 %v537_v63  ;;  %v2101_v63 = vld [vmem:[%s2854_s9 + $0x208] sm:$0xff] }
  0x9e   : > { %2469 = vmatprep.subr.mxu1 %v535_v0 }
  0x9f   : > { %2470 = vmatpush3.msra.mxu1 %v535_v0  ;;  %v869_v2 = vpop.permute.xlu0 %868  ;;  %v2099_v0 = vld [vmem:[%s2854_s9 + $0x1f8] sm:$0xff] }
  0xa0   : > { %2471 = vmatprep.subr.mxu1 %v533_v1  ;;  %2521 = vmatprep.subr.mxu0 %v869_v2  ;;  %v1175_v5 = vpop.permute.xlu1 %1174 }
  0xa1   : > { %2472 = vmatpush3.msra.mxu1 %v533_v1  ;;  %2522 = vmatpush3.msra.mxu0 %v869_v2  ;;  %v2102_v1 = vld [vmem:[%s2854_s9 + $0x210] sm:$0xff] }
  0xa2   : > { %2474 = vmatmul.mubr.f32.vlgmr.msra.gmra.mxu1 %v2069_v3  ;;  %2601 = vmatprep.subr.mxu1 %v1175_v5  ;;  %v2132_v3 = vld [vmem:[%s2854_s9 + $0x300] sm:$0xff] }
  0xa3   : > { %v867_v6 = vpop.permute.xlu0 %866  ;;  %2476 = vmatprep.mubr.f32.mxu1 %v2070_v4  ;;  %2602 = vmatpush3.msra.mxu1 %v1175_v5  ;;  %v2103_v4 = vld [vmem:[%s2854_s9 + $0x218] sm:$0xff]  ;;  %v2133_v5 = vld [vmem:[%s2854_s9 + $0x308] sm:$0xff] }
  0xa4   : > { %2523 = vmatprep.subr.mxu0 %v867_v6  ;;  %v1173_v9 = vpop.permute.xlu1 %1172 }
  0xa5   : > { %2524 = vmatpush3.msra.mxu0 %v867_v6  ;;  %2603 = vmatprep.subr.mxu1 %v1173_v9  ;;  %v2104_v6 = vld [vmem:[%s2854_s9 + $0x220] sm:$0xff] }
  0xa6   : > { %2477 = vmatmul.mubr.f32.gmra.mxu1 %v2071_v7  ;;  %v2134_v7 = vld [vmem:[%s2854_s9 + $0x310] sm:$0xff] }
  0xa7   : > { %v865_v10 = vpop.permute.xlu0 %864  ;;  %2479 = vmatprep.mubr.f32.mxu1 %v2072_v8  ;;  %2604 = vmatpush3.msra.mxu1 %v1173_v9  ;;  %v2105_v8 = vld [vmem:[%s2854_s9 + $0x228] sm:$0xff]  ;;  %v2135_v9 = vld [vmem:[%s2854_s9 + $0x318] sm:$0xff] }
  0xa8   : > { %2525 = vmatprep.subr.mxu0 %v865_v10  ;;  %v1171_v13 = vpop.permute.xlu1 %1170 }
  0xa9   : > { %2526 = vmatpush3.msra.mxu0 %v865_v10  ;;  %2605 = vmatprep.subr.mxu1 %v1171_v13  ;;  %v2106_v10 = vld [vmem:[%s2854_s9 + $0x230] sm:$0xff] }
  0xaa   : > { %2480 = vmatmul.mubr.f32.gmra.mxu1 %v2073_v11  ;;  %v2136_v11 = vld [vmem:[%s2854_s9 + $0x320] sm:$0xff] }
  0xab   : > { %v863_v14 = vpop.permute.xlu0 %862  ;;  %2482 = vmatprep.mubr.f32.mxu1 %v2074_v12  ;;  %2606 = vmatpush3.msra.mxu1 %v1171_v13  ;;  %v2107_v12 = vld [vmem:[%s2854_s9 + $0x238] sm:$0xff]  ;;  %v2137_v13 = vld [vmem:[%s2854_s9 + $0x328] sm:$0xff] }
  0xac   : > { %2527 = vmatprep.subr.mxu0 %v863_v14  ;;  %v1169_v17 = vpop.permute.xlu1 %1168 }
  0xad   : > { %2528 = vmatpush3.msra.mxu0 %v863_v14  ;;  %2607 = vmatprep.subr.mxu1 %v1169_v17  ;;  %v2108_v14 = vld [vmem:[%s2854_s9 + $0x240] sm:$0xff] }
  0xae   : > { %2483 = vmatmul.mubr.f32.gmra.mxu1 %v2075_v15  ;;  %v2138_v15 = vld [vmem:[%s2854_s9 + $0x330] sm:$0xff] }
  0xaf   : > { %v861_v18 = vpop.permute.xlu0 %860  ;;  %2485 = vmatprep.mubr.f32.mxu1 %v2076_v16  ;;  %2608 = vmatpush3.msra.mxu1 %v1169_v17  ;;  %v2109_v16 = vld [vmem:[%s2854_s9 + $0x248] sm:$0xff]  ;;  %v2139_v17 = vld [vmem:[%s2854_s9 + $0x338] sm:$0xff] }
  0xb0   : > { %2529 = vmatprep.subr.mxu0 %v861_v18  ;;  %v1167_v21 = vpop.permute.xlu1 %1166 }
  0xb1   : > { %2530 = vmatpush3.msra.mxu0 %v861_v18  ;;  %2609 = vmatprep.subr.mxu1 %v1167_v21  ;;  %v2110_v18 = vld [vmem:[%s2854_s9 + $0x250] sm:$0xff] }
  0xb2   : > { %2486 = vmatmul.mubr.f32.gmra.mxu1 %v2077_v19  ;;  %v2140_v19 = vld [vmem:[%s2854_s9 + $0x340] sm:$0xff] }
  0xb3   : > { %v859_v22 = vpop.permute.xlu0 %858  ;;  %2488 = vmatprep.mubr.f32.mxu1 %v2078_v20  ;;  %2610 = vmatpush3.msra.mxu1 %v1167_v21  ;;  %v2111_v20 = vld [vmem:[%s2854_s9 + $0x258] sm:$0xff]  ;;  %v2141_v21 = vld [vmem:[%s2854_s9 + $0x348] sm:$0xff] }
  0xb4   : > { %2531 = vmatprep.subr.mxu0 %v859_v22  ;;  %v1165_v25 = vpop.permute.xlu1 %1164 }
  0xb5   : > { %2532 = vmatpush3.msra.mxu0 %v859_v22  ;;  %2611 = vmatprep.subr.mxu1 %v1165_v25  ;;  %v2112_v22 = vld [vmem:[%s2854_s9 + $0x260] sm:$0xff] }
  0xb6   : > { %2489 = vmatmul.mubr.f32.gmra.mxu1 %v2079_v23  ;;  %v2142_v23 = vld [vmem:[%s2854_s9 + $0x350] sm:$0xff] }
  0xb7   : > { %v857_v26 = vpop.permute.xlu0 %856  ;;  %2491 = vmatprep.mubr.f32.mxu1 %v2080_v24  ;;  %2612 = vmatpush3.msra.mxu1 %v1165_v25  ;;  %v2113_v24 = vld [vmem:[%s2854_s9 + $0x268] sm:$0xff]  ;;  %v2143_v25 = vld [vmem:[%s2854_s9 + $0x358] sm:$0xff] }
  0xb8   : > { %2533 = vmatprep.subr.mxu0 %v857_v26  ;;  %v1163_v29 = vpop.permute.xlu1 %1162 }
  0xb9   : > { %2534 = vmatpush3.msra.mxu0 %v857_v26  ;;  %2613 = vmatprep.subr.mxu1 %v1163_v29  ;;  %v2114_v26 = vld [vmem:[%s2854_s9 + $0x270] sm:$0xff] }
  0xba   : > { %2492 = vmatmul.mubr.f32.gmra.mxu1 %v2081_v27  ;;  %v2144_v27 = vld [vmem:[%s2854_s9 + $0x360] sm:$0xff] }
  0xbb   : > { %v855_v30 = vpop.permute.xlu0 %854  ;;  %2494 = vmatprep.mubr.f32.mxu1 %v2082_v28  ;;  %2614 = vmatpush3.msra.mxu1 %v1163_v29  ;;  %v2115_v28 = vld [vmem:[%s2854_s9 + $0x278] sm:$0xff]  ;;  %v2145_v29 = vld [vmem:[%s2854_s9 + $0x368] sm:$0xff] }
  0xbc   : > { %2535 = vmatprep.subr.mxu0 %v855_v30  ;;  %v1161_v33 = vpop.permute.xlu1 %1160 }
  0xbd   : > { %2536 = vmatpush3.msra.mxu0 %v855_v30  ;;  %2615 = vmatprep.subr.mxu1 %v1161_v33  ;;  %v2116_v30 = vld [vmem:[%s2854_s9 + $0x280] sm:$0xff] }
  0xbe   : > { %2495 = vmatmul.mubr.f32.gmra.mxu1 %v2083_v31  ;;  %v2146_v31 = vld [vmem:[%s2854_s9 + $0x370] sm:$0xff] }
  0xbf   : > { %v853_v34 = vpop.permute.xlu0 %852  ;;  %2497 = vmatprep.mubr.f32.mxu1 %v2084_v32  ;;  %2616 = vmatpush3.msra.mxu1 %v1161_v33  ;;  %v2117_v32 = vld [vmem:[%s2854_s9 + $0x288] sm:$0xff]  ;;  %v2147_v33 = vld [vmem:[%s2854_s9 + $0x378] sm:$0xff] }
  0xc0   : > { %2537 = vmatprep.subr.mxu0 %v853_v34  ;;  %v1159_v37 = vpop.permute.xlu1 %1158 }
  0xc1   : > { %2538 = vmatpush3.msra.mxu0 %v853_v34  ;;  %2617 = vmatprep.subr.mxu1 %v1159_v37  ;;  %v2118_v34 = vld [vmem:[%s2854_s9 + $0x290] sm:$0xff] }
  0xc2   : > { %2498 = vmatmul.mubr.f32.gmra.mxu1 %v2085_v35  ;;  %v2148_v35 = vld [vmem:[%s2854_s9 + $0x380] sm:$0xff] }
  0xc3   : > { %v851_v38 = vpop.permute.xlu0 %850  ;;  %2500 = vmatprep.mubr.f32.mxu1 %v2086_v36  ;;  %2618 = vmatpush3.msra.mxu1 %v1159_v37  ;;  %v2119_v36 = vld [vmem:[%s2854_s9 + $0x298] sm:$0xff]  ;;  %v2149_v37 = vld [vmem:[%s2854_s9 + $0x388] sm:$0xff] }
  0xc4   : > { %2539 = vmatprep.subr.mxu0 %v851_v38  ;;  %v1157_v41 = vpop.permute.xlu1 %1156 }
  0xc5   : > { %2540 = vmatpush3.msra.mxu0 %v851_v38  ;;  %2619 = vmatprep.subr.mxu1 %v1157_v41  ;;  %v2120_v38 = vld [vmem:[%s2854_s9 + $0x2a0] sm:$0xff] }
  0xc6   : > { %2501 = vmatmul.mubr.f32.gmra.mxu1 %v2087_v39  ;;  %v2150_v39 = vld [vmem:[%s2854_s9 + $0x390] sm:$0xff] }
  0xc7   : > { %v849_v42 = vpop.permute.xlu0 %848  ;;  %2503 = vmatprep.mubr.f32.mxu1 %v2088_v40  ;;  %2620 = vmatpush3.msra.mxu1 %v1157_v41  ;;  %v2121_v40 = vld [vmem:[%s2854_s9 + $0x2a8] sm:$0xff]  ;;  %v2151_v41 = vld [vmem:[%s2854_s9 + $0x398] sm:$0xff] }
  0xc8   : > { %2541 = vmatprep.subr.mxu0 %v849_v42  ;;  %v1155_v45 = vpop.permute.xlu1 %1154 }
  0xc9   : > { %2542 = vmatpush3.msra.mxu0 %v849_v42  ;;  %2621 = vmatprep.subr.mxu1 %v1155_v45  ;;  %v2122_v42 = vld [vmem:[%s2854_s9 + $0x2b0] sm:$0xff] }
  0xca   : > { %2504 = vmatmul.mubr.f32.gmra.mxu1 %v2089_v43  ;;  %v2152_v43 = vld [vmem:[%s2854_s9 + $0x3a0] sm:$0xff] }
  0xcb   : > { %v847_v46 = vpop.permute.xlu0 %846  ;;  %2506 = vmatprep.mubr.f32.mxu1 %v2090_v44  ;;  %2622 = vmatpush3.msra.mxu1 %v1155_v45  ;;  %v2123_v44 = vld [vmem:[%s2854_s9 + $0x2b8] sm:$0xff]  ;;  %v2153_v45 = vld [vmem:[%s2854_s9 + $0x3a8] sm:$0xff] }
  0xcc   : > { %2543 = vmatprep.subr.mxu0 %v847_v46  ;;  %v1153_v49 = vpop.permute.xlu1 %1152 }
  0xcd   : > { %2544 = vmatpush3.msra.mxu0 %v847_v46  ;;  %2623 = vmatprep.subr.mxu1 %v1153_v49  ;;  %v2124_v46 = vld [vmem:[%s2854_s9 + $0x2c0] sm:$0xff] }
  0xce   : > { %2507 = vmatmul.mubr.f32.gmra.mxu1 %v2091_v47  ;;  %v2154_v47 = vld [vmem:[%s2854_s9 + $0x3b0] sm:$0xff] }
  0xcf   : > { %v845_v50 = vpop.permute.xlu0 %844  ;;  %2509 = vmatprep.mubr.f32.mxu1 %v2092_v48  ;;  %2624 = vmatpush3.msra.mxu1 %v1153_v49  ;;  %v2125_v48 = vld [vmem:[%s2854_s9 + $0x2c8] sm:$0xff]  ;;  %v2155_v49 = vld [vmem:[%s2854_s9 + $0x3b8] sm:$0xff] }
  0xd0   : > { %2545 = vmatprep.subr.mxu0 %v845_v50  ;;  %v1151_v53 = vpop.permute.xlu1 %1150 }
  0xd1   : > { %2546 = vmatpush3.msra.mxu0 %v845_v50  ;;  %2625 = vmatprep.subr.mxu1 %v1151_v53  ;;  %v2126_v50 = vld [vmem:[%s2854_s9 + $0x2d0] sm:$0xff] }
  0xd2   : > { %2510 = vmatmul.mubr.f32.gmra.mxu1 %v2093_v51  ;;  %v2156_v51 = vld [vmem:[%s2854_s9 + $0x3c0] sm:$0xff] }
  0xd3   : > { %v843_v54 = vpop.permute.xlu0 %842  ;;  %2512 = vmatprep.mubr.f32.mxu1 %v2094_v52  ;;  %2626 = vmatpush3.msra.mxu1 %v1151_v53  ;;  %v2127_v52 = vld [vmem:[%s2854_s9 + $0x2d8] sm:$0xff]  ;;  %v2157_v53 = vld [vmem:[%s2854_s9 + $0x3c8] sm:$0xff] }
  0xd4   : > { %2547 = vmatprep.subr.mxu0 %v843_v54  ;;  %v1149_v57 = vpop.permute.xlu1 %1148 }
  0xd5   : > { %2548 = vmatpush3.msra.mxu0 %v843_v54  ;;  %2627 = vmatprep.subr.mxu1 %v1149_v57  ;;  %v2128_v54 = vld [vmem:[%s2854_s9 + $0x2e0] sm:$0xff] }
  0xd6   : > { %2513 = vmatmul.mubr.f32.gmra.mxu1 %v2095_v55  ;;  %v2158_v55 = vld [vmem:[%s2854_s9 + $0x3d0] sm:$0xff] }
  0xd7   : > { %v841_v58 = vpop.permute.xlu0 %840  ;;  %2515 = vmatprep.mubr.f32.mxu1 %v2096_v56  ;;  %2628 = vmatpush3.msra.mxu1 %v1149_v57  ;;  %v2129_v56 = vld [vmem:[%s2854_s9 + $0x2e8] sm:$0xff]  ;;  %v2159_v57 = vld [vmem:[%s2854_s9 + $0x3d8] sm:$0xff] }
  0xd8   : > { %2549 = vmatprep.subr.mxu0 %v841_v58  ;;  %v1147_v61 = vpop.permute.xlu1 %1146 }
  0xd9   : > { %2550 = vmatpush3.msra.mxu0 %v841_v58  ;;  %2629 = vmatprep.subr.mxu1 %v1147_v61  ;;  %v2130_v58 = vld [vmem:[%s2854_s9 + $0x2f0] sm:$0xff] }
  0xda   : > { %2516 = vmatmul.mubr.f32.gmra.mxu1 %v2097_v59  ;;  %v2160_v59 = vld [vmem:[%s2854_s9 + $0x3e0] sm:$0xff] }
  0xdb   : > { %v839_v62 = vpop.permute.xlu0 %838  ;;  %2518 = vmatprep.mubr.f32.mxu1 %v2098_v60  ;;  %2630 = vmatpush3.msra.mxu1 %v1147_v61  ;;  %v2131_v60 = vld [vmem:[%s2854_s9 + $0x2f8] sm:$0xff]  ;;  %v2161_v61 = vld [vmem:[%s2854_s9 + $0x3e8] sm:$0xff] }
  0xdc   : > { %2551 = vmatprep.subr.mxu0 %v839_v62  ;;  %v1145_v2 = vpop.permute.xlu1 %1144 }
  0xdd   : > { %2552 = vmatpush3.msra.mxu0 %v839_v62  ;;  %2631 = vmatprep.subr.mxu1 %v1145_v2  ;;  %v2162_v62 = vld [vmem:[%s2854_s9 + $0x3f0] sm:$0xff] }
  0xde   : > { %2554 = vmatmul.mubr.f32.vlgmr.msra.gmra.mxu0 %v2101_v63  ;;  %2519 = vmatmul.mubr.f32.gmra.mxu1 %v2099_v0  ;;  %v2163_v63 = vld [vmem:[%s2854_s9 + $0x3f8] sm:$0xff] }
  0xdf   : > { %2556 = vmatprep.mubr.f32.mxu0 %v2102_v1  ;;  %2632 = vmatpush3.msra.mxu1 %v1145_v2 }
  0xe0   : > { %2633 = vmatprep.mubr.f32.mxu1 %v2132_v3 }
  0xe2   : > { %2557 = vmatmul.mubr.f32.gmra.mxu0 %v2103_v4  ;;  %2634 = vmatmul.mubr.f32.vlgmr.msra.gmra.mxu1 %v2133_v5 }
  0xe3   : > { %2559 = vmatprep.mubr.f32.mxu0 %v2104_v6  ;;  %2636 = vmatprep.mubr.f32.mxu1 %v2134_v7 }
  0xe6   : > { %2560 = vmatmul.mubr.f32.gmra.mxu0 %v2105_v8  ;;  %2637 = vmatmul.mubr.f32.gmra.mxu1 %v2135_v9 }
  0xe7   : > { %2562 = vmatprep.mubr.f32.mxu0 %v2106_v10  ;;  %2639 = vmatprep.mubr.f32.mxu1 %v2136_v11 }
  0xea   : > { %2563 = vmatmul.mubr.f32.gmra.mxu0 %v2107_v12  ;;  %2640 = vmatmul.mubr.f32.gmra.mxu1 %v2137_v13 }
  0xeb   : > { %2565 = vmatprep.mubr.f32.mxu0 %v2108_v14  ;;  %2642 = vmatprep.mubr.f32.mxu1 %v2138_v15 }
  0xee   : > { %2566 = vmatmul.mubr.f32.gmra.mxu0 %v2109_v16  ;;  %2643 = vmatmul.mubr.f32.gmra.mxu1 %v2139_v17 }
  0xef   : > { %2568 = vmatprep.mubr.f32.mxu0 %v2110_v18  ;;  %2645 = vmatprep.mubr.f32.mxu1 %v2140_v19 }
  0xf2   : > { %2569 = vmatmul.mubr.f32.gmra.mxu0 %v2111_v20  ;;  %2646 = vmatmul.mubr.f32.gmra.mxu1 %v2141_v21 }
  0xf3   : > { %2571 = vmatprep.mubr.f32.mxu0 %v2112_v22  ;;  %2648 = vmatprep.mubr.f32.mxu1 %v2142_v23 }
  0xf5   : > { %v3127_v0 = vpop.f32.mrf.mxu0 }
  0xf6   : > { %2572 = vmatmul.mubr.f32.gmra.mxu0 %v2113_v24  ;;  %2649 = vmatmul.mubr.f32.gmra.mxu1 %v2143_v25 }
  0xf7   : > { %2574 = vmatprep.mubr.f32.mxu0 %v2114_v26  ;;  %2651 = vmatprep.mubr.f32.mxu1 %v2144_v27  ;;  %v3129_v1 = vpop.f32.mrf.mxu0 }
  0xf9   : > { %v3131_v2 = vpop.f32.mrf.mxu0 }
  0xfa   : > { %2575 = vmatmul.mubr.f32.gmra.mxu0 %v2115_v28  ;;  %2652 = vmatmul.mubr.f32.gmra.mxu1 %v2145_v29 }
  0xfb   : > { %2577 = vmatprep.mubr.f32.mxu0 %v2116_v30  ;;  %2654 = vmatprep.mubr.f32.mxu1 %v2146_v31  ;;  %v3133_v3 = vpop.f32.mrf.mxu0 }
  0xfd   : > { %v3135_v4 = vpop.f32.mrf.mxu0 }
  0xfe   : > { %2578 = vmatmul.mubr.f32.gmra.mxu0 %v2117_v32  ;;  %2655 = vmatmul.mubr.f32.gmra.mxu1 %v2147_v33 }
  0xff   : > { %2580 = vmatprep.mubr.f32.mxu0 %v2118_v34  ;;  %2657 = vmatprep.mubr.f32.mxu1 %v2148_v35  ;;  %v3137_v5 = vpop.f32.mrf.mxu0 }
 0x101   : > { %v3139_v6 = vpop.f32.mrf.mxu0 }
 0x102   : > { %2581 = vmatmul.mubr.f32.gmra.mxu0 %v2119_v36  ;;  %2658 = vmatmul.mubr.f32.gmra.mxu1 %v2149_v37 }
 0x103   : > { %2583 = vmatprep.mubr.f32.mxu0 %v2120_v38  ;;  %2660 = vmatprep.mubr.f32.mxu1 %v2150_v39  ;;  %v3141_v7 = vpop.f32.mrf.mxu0 }
 0x105   : > { %v3143_v8 = vpop.f32.mrf.mxu0 }
 0x106   : > { %2584 = vmatmul.mubr.f32.gmra.mxu0 %v2121_v40  ;;  %2661 = vmatmul.mubr.f32.gmra.mxu1 %v2151_v41 }
 0x107   : > { %2586 = vmatprep.mubr.f32.mxu0 %v2122_v42  ;;  %2663 = vmatprep.mubr.f32.mxu1 %v2152_v43  ;;  %v3145_v9 = vpop.f32.mrf.mxu0 }
 0x109   : > { %v3147_v10 = vpop.f32.mrf.mxu0 }
 0x10a   : > { %2587 = vmatmul.mubr.f32.gmra.mxu0 %v2123_v44  ;;  %2664 = vmatmul.mubr.f32.gmra.mxu1 %v2153_v45 }
 0x10b   : > { %2589 = vmatprep.mubr.f32.mxu0 %v2124_v46  ;;  %2666 = vmatprep.mubr.f32.mxu1 %v2154_v47  ;;  %v3149_v11 = vpop.f32.mrf.mxu0 }
 0x10d   : > { %v3151_v12 = vpop.f32.mrf.mxu0 }
 0x10e   : > { %2590 = vmatmul.mubr.f32.gmra.mxu0 %v2125_v48  ;;  %2667 = vmatmul.mubr.f32.gmra.mxu1 %v2155_v49 }
 0x10f   : > { %2592 = vmatprep.mubr.f32.mxu0 %v2126_v50  ;;  %2669 = vmatprep.mubr.f32.mxu1 %v2156_v51  ;;  %v3153_v13 = vpop.f32.mrf.mxu0 }
 0x111   : > { %v3155_v14 = vpop.f32.mrf.mxu0 }
 0x112   : > { %2593 = vmatmul.mubr.f32.gmra.mxu0 %v2127_v52  ;;  %2670 = vmatmul.mubr.f32.gmra.mxu1 %v2157_v53 }
 0x113   : > { %2595 = vmatprep.mubr.f32.mxu0 %v2128_v54  ;;  %2672 = vmatprep.mubr.f32.mxu1 %v2158_v55  ;;  %v3157_v15 = vpop.f32.mrf.mxu0 }
 0x115   : > { %v3159_v16 = vpop.f32.mrf.mxu0 }
 0x116   : > { %2596 = vmatmul.mubr.f32.gmra.mxu0 %v2129_v56  ;;  %2673 = vmatmul.mubr.f32.gmra.mxu1 %v2159_v57 }
 0x117   : > { %2598 = vmatprep.mubr.f32.mxu0 %v2130_v58  ;;  %2675 = vmatprep.mubr.f32.mxu1 %v2160_v59  ;;  %v3162_v19 = vpop.f32.mrf.mxu0 }
 0x119   : > { %v3165_v20 = vpop.f32.mrf.mxu0 }
 0x11a   : > { %2599 = vmatmul.mubr.f32.gmra.mxu0 %v2131_v60  ;;  %2676 = vmatmul.mubr.f32.gmra.mxu1 %v2161_v61 }
 0x11b   : > { %2678 = vmatprep.mubr.f32.mxu1 %v2162_v62  ;;  %v3167_v21 = vpop.f32.mrf.mxu0 }
 0x11d   : > { %v3169_v22 = vpop.f32.mrf.mxu0 }
 0x11e   : > { %2679 = vmatmul.mubr.f32.gmra.mxu1 %v2163_v63 }
 0x11f   : > { %v3171_v23 = vpop.f32.mrf.mxu0 }
 0x121   : > { %v3173_v24 = vpop.f32.mrf.mxu0 }
 0x123   : > { %v3175_v25 = vpop.f32.mrf.mxu0 }
 0x125   : > { %v3177_v26 = vpop.f32.mrf.mxu0 }
 0x127   : > { %v3179_v28 = vpop.f32.mrf.mxu0 }
 0x129   : > { %v3181_v30 = vpop.f32.mrf.mxu0 }
 0x12b   : > { %v3183_v32 = vpop.f32.mrf.mxu0 }
 0x12d   : > { %v3185_v35 = vpop.f32.mrf.mxu0 }
 0x12f   : > { %v3187_v37 = vpop.f32.mrf.mxu0 }
 0x131   : > { %v3189_v39 = vpop.f32.mrf.mxu0 }
 0x133   : > { %v3191_v42 = vpop.f32.mrf.mxu0 }
 0x162   : > { %v2475_v17 = vpop.f32.mrf.mxu1 }
 0x163   : > { %1451 = vrot.lane.b32.xlu1 %v2475_v17, %s2738_s20 }
 0x164   : > { %v646_v18 = vpop.f32.mrf.mxu1 }
 0x165   : > { %1449 = vrot.lane.b32.xlu0 %v646_v18, %s2738_s20 }
 0x166   : > { %v2478_v27 = vpop.f32.mrf.mxu1 }
 0x168   : > { %v656_v29 = vpop.f32.mrf.mxu1 }
 0x16a   : > { %v2481_v31 = vpop.f32.mrf.mxu1 }
 0x16c   : > { %v666_v33 = vpop.f32.mrf.mxu1 }
 0x16e   : > { %v2484_v34 = vpop.f32.mrf.mxu1 }
 0x170   : > { %v676_v36 = vpop.f32.mrf.mxu1 }
 0x172   : > { %v2487_v38 = vpop.f32.mrf.mxu1 }
 0x174   : > { %v686_v40 = vpop.f32.mrf.mxu1 }
 0x176   : > { %v2490_v41 = vpop.f32.mrf.mxu1 }
 0x178   : > { %v696_v44 = vpop.f32.mrf.mxu1 }
 0x17a   : > { %v2493_v46 = vpop.f32.mrf.mxu1 }
 0x17c   : > { %v706_v48 = vpop.f32.mrf.mxu1 }
 0x17e   : > { %v2496_v49 = vpop.f32.mrf.mxu1 }
 0x180   : > { %v716_v51 = vpop.f32.mrf.mxu1 }
 0x182   : > { %v2499_v53 = vpop.f32.mrf.mxu1 }
 0x184   : > { %v726_v55 = vpop.f32.mrf.mxu1 }
 0x186   : > { %v2502_v56 = vpop.f32.mrf.mxu1 }
 0x188   : > { %v736_v58 = vpop.f32.mrf.mxu1 }
 0x18a   : > { %v2505_v60 = vpop.f32.mrf.mxu1 }
 0x18c   : > { %v746_v62 = vpop.f32.mrf.mxu1 }
 0x18e   : > { %v2508_v63 = vpop.f32.mrf.mxu1 }
 0x190   : > { %v756_v18 = vpop.f32.mrf.mxu1 }
 0x19e   : > { %v2555_v43 = vpop.f32.mrf.mxu0 }
 0x19f   : > { %1579 = vrot.lane.b32.xlu1 %v2555_v43, %s2739_s6 }
 0x1a0   : > { %v952_v45 = vpop.f32.mrf.mxu0 }
 0x1a1   : > { %1577 = vrot.lane.b32.xlu0 %v952_v45, %s2739_s6 }
 0x1a2   : > { %v2558_v47 = vpop.f32.mrf.mxu0 }
 0x1a3   : > { %1455 = vrot.lane.b32.xlu1 %v2478_v27, %s2738_s20 }
 0x1a4   : > { %v962_v50 = vpop.f32.mrf.mxu0 }
 0x1a5   : > { %1453 = vrot.lane.b32.xlu0 %v656_v29, %s2738_s20  ;;  %v2511_v29 = vpop.f32.mrf.mxu1 }
 0x1a6   : > { %v2561_v52 = vpop.f32.mrf.mxu0 }
 0x1a7   : > { %1583 = vrot.lane.b32.xlu1 %v2558_v47, %s2739_s6 }
 0x1a8   : > { %v972_v54 = vpop.f32.mrf.mxu0 }
 0x1a9   : > { %1581 = vrot.lane.b32.xlu0 %v962_v50, %s2739_s6 }
 0x1aa   : > { %v2564_v57 = vpop.f32.mrf.mxu0 }
 0x1ab   : > { %1459 = vrot.lane.b32.xlu1 %v2481_v31, %s2738_s20 }
 0x1ac   : > { %v982_v59 = vpop.f32.mrf.mxu0 }
 0x1ad   : > { %1457 = vrot.lane.b32.xlu0 %v666_v33, %s2738_s20  ;;  %v766_v33 = vpop.f32.mrf.mxu1 }
 0x1ae   : > { %v2567_v61 = vpop.f32.mrf.mxu0 }
 0x1af   : > { %1587 = vrot.lane.b32.xlu1 %v2561_v52, %s2739_s6 }
 0x1b0   : > { %v992_v17 = vpop.f32.mrf.mxu0 }
 0x1b1   : > { %1585 = vrot.lane.b32.xlu0 %v972_v54, %s2739_s6 }
 0x1b2   : > { %v2570_v27 = vpop.f32.mrf.mxu0 }
 0x1b3   : > { %1463 = vrot.lane.b32.xlu1 %v2484_v34, %s2738_s20  ;;  %v2514_v34 = vpop.f32.mrf.mxu1 }
 0x1b4   : > { %v1002_v31 = vpop.f32.mrf.mxu0 }
 0x1b5   : > { %1461 = vrot.lane.b32.xlu0 %v676_v36, %s2738_s20 }
 0x1b6   : > { %v2573_v36 = vpop.f32.mrf.mxu0 }
 0x1b7   : > { %1591 = vrot.lane.b32.xlu1 %v2564_v57, %s2739_s6 }
 0x1b9   : > { %1589 = vrot.lane.b32.xlu0 %v982_v59, %s2739_s6 }
 0x1bb   : > { %1467 = vrot.lane.b32.xlu1 %v2487_v38, %s2738_s20  ;;  %v776_v38 = vpop.f32.mrf.mxu1 }
 0x1bd   : > { %1465 = vrot.lane.b32.xlu0 %v686_v40, %s2738_s20  ;;  %v1012_v40 = vpop.f32.mrf.mxu0 }
 0x1bf   : > { %1595 = vrot.lane.b32.xlu1 %v2567_v61, %s2739_s6  ;;  %v2576_v43 = vpop.f32.mrf.mxu0 }
 0x1c1   : > { %1593 = vrot.lane.b32.xlu0 %v992_v17, %s2739_s6 }
 0x1c3   : > { %1471 = vrot.lane.b32.xlu1 %v2490_v41, %s2738_s20  ;;  %v2517_v41 = vpop.f32.mrf.mxu1 }
 0x1c5   : > { %1469 = vrot.lane.b32.xlu0 %v696_v44, %s2738_s20  ;;  %v786_v44 = vpop.f32.mrf.mxu1 }
 0x1c7   : > { %1599 = vrot.lane.b32.xlu1 %v2570_v27, %s2739_s6  ;;  %v3221_v45 = vpop.f32.mrf.mxu1 }
 0x1c9   : > { %1597 = vrot.lane.b32.xlu0 %v1002_v31, %s2739_s6  ;;  %v3225_v47 = vpop.f32.mrf.mxu1 }
 0x1cb   : > { %1475 = vrot.lane.b32.xlu1 %v2493_v46, %s2738_s20  ;;  %v1022_v46 = vpop.f32.mrf.mxu0  ;;  %v3228_v50 = vpop.f32.mrf.mxu1 }
 0x1cd   : > { %1473 = vrot.lane.b32.xlu0 %v706_v48, %s2738_s20  ;;  %v2579_v48 = vpop.f32.mrf.mxu0 }
 0x1cf   : > { %1603 = vrot.lane.b32.xlu1 %v2573_v36, %s2739_s6 }
 0x1d1   : > { %1601 = vrot.lane.b32.xlu0 %v1012_v40, %s2739_s6 }
 0x1d3   : > { %1479 = vrot.lane.b32.xlu1 %v2496_v49, %s2738_s20  ;;  %v1032_v49 = vpop.f32.mrf.mxu0 }
 0x1d5   : > { %1477 = vrot.lane.b32.xlu0 %v716_v51, %s2738_s20  ;;  %v3232_v51 = vpop.f32.mrf.mxu1  ;;  %v2582_v52 = vpop.f32.mrf.mxu0 }
 0x1d7   : > { %1607 = vrot.lane.b32.xlu1 %v2576_v43, %s2739_s6  ;;  %v3236_v54 = vpop.f32.mrf.mxu1 }
 0x1d9   : > { %1605 = vrot.lane.b32.xlu0 %v1022_v46, %s2739_s6  ;;  %v3240_v57 = vpop.f32.mrf.mxu1 }
 0x1db   : > { %1483 = vrot.lane.b32.xlu1 %v2499_v53, %s2738_s20  ;;  %v1042_v53 = vpop.f32.mrf.mxu0  ;;  %v3244_v59 = vpop.f32.mrf.mxu1 }
 0x1dd   : > { %1481 = vrot.lane.b32.xlu0 %v726_v55, %s2738_s20  ;;  %v2585_v55 = vpop.f32.mrf.mxu0  ;;  %v3248_v61 = vpop.f32.mrf.mxu1 }
 0x1df   : > { %1611 = vrot.lane.b32.xlu1 %v2579_v48, %s2739_s6  ;;  %v3252_v17 = vpop.f32.mrf.mxu1  ;;  %v1452_v48 = vpop.permute.xlu1 %1451 }
 0x1e1   : > { %1609 = vrot.lane.b32.xlu0 %v1032_v49, %s2739_s6  ;;  %v3256_v27 = vpop.f32.mrf.mxu1 }
 0x1e3   : > { %1487 = vrot.lane.b32.xlu1 %v2502_v56, %s2738_s20  ;;  %v1052_v56 = vpop.f32.mrf.mxu0  ;;  %v3260_v31 = vpop.f32.mrf.mxu1 }
 0x1e5   : > { %1485 = vrot.lane.b32.xlu0 %v736_v58, %s2738_s20  ;;  %v2588_v58 = vpop.f32.mrf.mxu0  ;;  %v3264_v36 = vpop.f32.mrf.mxu1 }
 0x1e7   : > { %1615 = vrot.lane.b32.xlu1 %v2582_v52, %s2739_s6  ;;  %v3268_v40 = vpop.f32.mrf.mxu1  ;;  %v1803_v52 = vsel %vm1801_vm0, %v3127_v0, %v1452_v48 }
 0x1e9   : > { %1613 = vrot.lane.b32.xlu0 %v1042_v53, %s2739_s6  ;;  %v3272_v43 = vpop.f32.mrf.mxu1 }
 0x1eb   : > { %1491 = vrot.lane.b32.xlu1 %v2505_v60, %s2738_s20  ;;  %v1062_v60 = vpop.f32.mrf.mxu0  ;;  %v3276_v46 = vpop.f32.mrf.mxu1 }
 0x1ed   : > { %1489 = vrot.lane.b32.xlu0 %v746_v62, %s2738_s20  ;;  %v2591_v62 = vpop.f32.mrf.mxu0  ;;  %v3280_v49 = vpop.f32.mrf.mxu1 }
 0x1ef   : > { %1619 = vrot.lane.b32.xlu1 %v2585_v55, %s2739_s6 }
 0x1f1   : > { %1617 = vrot.lane.b32.xlu0 %v1052_v56, %s2739_s6 }
 0x1f3   : > { %1495 = vrot.lane.b32.xlu1 %v2508_v63, %s2738_s20  ;;  %v1072_v63 = vpop.f32.mrf.mxu0 }
 0x1f5   : > { %1493 = vrot.lane.b32.xlu0 %v756_v18, %s2738_s20  ;;  %v2594_v18 = vpop.f32.mrf.mxu0 }
 0x1f7   : > { %1623 = vrot.lane.b32.xlu1 %v2588_v58, %s2739_s6 }
 0x1f9   : > { %1621 = vrot.lane.b32.xlu0 %v1062_v60, %s2739_s6  ;;  %v2656_v60 = vpop.f32.mrf.mxu1 }
 0x1fb   : > { %1499 = vrot.lane.b32.xlu1 %v2511_v29, %s2738_s20  ;;  %v1082_v29 = vpop.f32.mrf.mxu0 }
 0x1fd   : > { %1497 = vrot.lane.b32.xlu0 %v766_v33, %s2738_s20  ;;  %v2597_v33 = vpop.f32.mrf.mxu0 }
 0x1ff   : > { %1627 = vrot.lane.b32.xlu1 %v2591_v62, %s2739_s6 }
 0x201   : > { %1625 = vrot.lane.b32.xlu0 %v1072_v63, %s2739_s6 }
 0x203   : > { %1503 = vrot.lane.b32.xlu1 %v2514_v34, %s2738_s20  ;;  %v1450_v34 = vpop.permute.xlu0 %1449 }
 0x205   : > { %1501 = vrot.lane.b32.xlu0 %v776_v38, %s2738_s20  ;;  %v1092_v38 = vpop.f32.mrf.mxu0 }
 0x207   : > { %1631 = vrot.lane.b32.xlu1 %v2594_v18, %s2739_s6  ;;  %v2600_v58 = vpop.f32.mrf.mxu0  ;;  %v1328_v18 = vpop.f32.mrf.mxu1 }
 0x209   : > { %1629 = vrot.lane.b32.xlu0 %v1082_v29, %s2739_s6  ;;  %v1102_v63 = vpop.f32.mrf.mxu0 }
 0x20b   : > { %1507 = vrot.lane.b32.xlu1 %v2517_v41, %s2738_s20 }
 0x20d   : > { %1505 = vrot.lane.b32.xlu0 %v786_v44, %s2738_s20  ;;  %v1802_v44 = vsel %vm1801_vm0, %v3129_v1, %v1450_v34  ;;  %v2659_v34 = vpop.f32.mrf.mxu1 }
 0x20f   : > { %1635 = vrot.lane.b32.xlu1 %v2597_v33, %s2739_s6 }
 0x211   : > { %v1580_v53 = vpop.permute.xlu1 %1579  ;;  %1633 = vrot.lane.b32.xlu0 %v1092_v38, %s2739_s6 }
 0x212   : > { %v3286_v41 = vsel %vm1834_vm1, %v1803_v52, %v1580_v53  ;;  %v1338_v52 = vpop.f32.mrf.mxu1 }
 0x213   : > { %v1578_v55 = vpop.permute.xlu0 %1577  ;;  %1511 = vrot.lane.b32.xlu1 %v3221_v45, %s2738_s20 }
 0x214   : > { %v3293_v56 = vsel %vm1834_vm1, %v1802_v44, %v1578_v55 }
 0x215   : > { %v1456_v62 = vpop.permute.xlu1 %1455  ;;  %1509 = vrot.lane.b32.xlu0 %v3225_v47, %s2738_s20 }
 0x216   : > { %v1805_v1 = vsel %vm1801_vm0, %v3131_v2, %v1456_v62 }
 0x217   : > { %v1454_v0 = vpop.permute.xlu0 %1453  ;;  %1639 = vrot.lane.b32.xlu1 %v2600_v58, %s2739_s6 }
 0x218   : > { %v1804_v33 = vsel %vm1801_vm0, %v3133_v3, %v1454_v0 }
 0x219   : > { %v1584_v29 = vpop.permute.xlu1 %1583  ;;  %1637 = vrot.lane.b32.xlu0 %v1102_v63, %s2739_s6 }
 0x21a   : > { %v3302_v45 = vsel %vm1834_vm1, %v1805_v1, %v1584_v29 }
 0x21b   : > { %v1582_v48 = vpop.permute.xlu0 %1581  ;;  %1707 = vrot.lane.b32.xlu1 %v3228_v50, %s2740_s7 }
 0x21c   : > { %v3309_v47 = vsel %vm1834_vm1, %v1804_v33, %v1582_v48 }
 0x21d   : > { %v1460_v38 = vpop.permute.xlu1 %1459  ;;  %1705 = vrot.lane.b32.xlu0 %v3232_v51, %s2740_s7 }
 0x21e   : > { %v1807_v3 = vsel %vm1801_vm0, %v3135_v4, %v1460_v38 }
 0x21f   : > { %v1458_v2 = vpop.permute.xlu0 %1457  ;;  %1711 = vrot.lane.b32.xlu1 %v3236_v54, %s2740_s7  ;;  %v2662_v54 = vpop.f32.mrf.mxu1 }
 0x220   : > { %v1806_v44 = vsel %vm1801_vm0, %v3137_v5, %v1458_v2 }
 0x221   : > { %v1588_v53 = vpop.permute.xlu1 %1587  ;;  %1709 = vrot.lane.b32.xlu0 %v3240_v57, %s2740_s7  ;;  %v1348_v57 = vpop.f32.mrf.mxu1 }
 0x222   : > { %v3320_v50 = vsel %vm1834_vm1, %v1807_v3, %v1588_v53 }
 0x223   : > { %v1586_v55 = vpop.permute.xlu0 %1585  ;;  %1715 = vrot.lane.b32.xlu1 %v3244_v59, %s2740_s7 }
 0x224   : > { %v3327_v51 = vsel %vm1834_vm1, %v1806_v44, %v1586_v55 }
 0x225   : > { %v1464_v58 = vpop.permute.xlu1 %1463  ;;  %1713 = vrot.lane.b32.xlu0 %v3248_v61, %s2740_s7 }
 0x226   : > { %v1809_v5 = vsel %vm1801_vm0, %v3139_v6, %v1464_v58 }
 0x227   : > { %v1462_v4 = vpop.permute.xlu0 %1461  ;;  %1719 = vrot.lane.b32.xlu1 %v3252_v17, %s2740_s7  ;;  %v2665_v17 = vpop.f32.mrf.mxu1 }
 0x228   : > { %v1808_v0 = vsel %vm1801_vm0, %v3141_v7, %v1462_v4 }
 0x229   : > { %v1592_v62 = vpop.permute.xlu1 %1591  ;;  %1717 = vrot.lane.b32.xlu0 %v3256_v27, %s2740_s7  ;;  %v1358_v27 = vpop.f32.mrf.mxu1 }
 0x22a   : > { %v3338_v59 = vsel %vm1834_vm1, %v1809_v5, %v1592_v62 }
 0x22b   : > { %v1590_v63 = vpop.permute.xlu0 %1589  ;;  %1723 = vrot.lane.b32.xlu1 %v3260_v31, %s2740_s7 }
 0x22c   : > { %v3345_v61 = vsel %vm1834_vm1, %v1808_v0, %v1590_v63 }
 0x22d   : > { %v1468_v1 = vpop.permute.xlu1 %1467  ;;  %1721 = vrot.lane.b32.xlu0 %v3264_v36, %s2740_s7 }
 0x22e   : > { %v1811_v7 = vsel %vm1801_vm0, %v3143_v8, %v1468_v1 }
 0x22f   : > { %v1466_v6 = vpop.permute.xlu0 %1465  ;;  %1727 = vrot.lane.b32.xlu1 %v3268_v40, %s2740_s7  ;;  %v2668_v40 = vpop.f32.mrf.mxu1 }
 0x230   : > { %v1810_v33 = vsel %vm1801_vm0, %v3145_v9, %v1466_v6 }
 0x231   : > { %v1596_v29 = vpop.permute.xlu1 %1595  ;;  %1725 = vrot.lane.b32.xlu0 %v3272_v43, %s2740_s7  ;;  %v1368_v43 = vpop.f32.mrf.mxu1 }
 0x232   : > { %v3356_v31 = vsel %vm1834_vm1, %v1811_v7, %v1596_v29 }
 0x233   : > { %v1594_v48 = vpop.permute.xlu0 %1593  ;;  %1731 = vrot.lane.b32.xlu1 %v3276_v46, %s2740_s7 }
 0x234   : > { %v3363_v36 = vsel %vm1834_vm1, %v1810_v33, %v1594_v48 }
 0x235   : > { %v1472_v38 = vpop.permute.xlu1 %1471  ;;  %1729 = vrot.lane.b32.xlu0 %v3280_v49, %s2740_s7 }
 0x236   : > { %v1813_v2 = vsel %vm1801_vm0, %v3147_v10, %v1472_v38 }
 0x237   : > { %v1470_v8 = vpop.permute.xlu0 %1469  ;;  %1735 = vrot.lane.b32.xlu1 %v2656_v60, %s2740_s7  ;;  %v2671_v60 = vpop.f32.mrf.mxu1 }
 0x238   : > { %v1812_v3 = vsel %vm1801_vm0, %v3149_v11, %v1470_v8 }
 0x239   : > { %v1600_v9 = vpop.permute.xlu1 %1599  ;;  %1733 = vrot.lane.b32.xlu0 %v1328_v18, %s2740_s7  ;;  %v1378_v18 = vpop.f32.mrf.mxu1 }
 0x23a   : > { %v3372_v46 = vsel %vm1834_vm1, %v1813_v2, %v1600_v9 }
 0x23b   : > { %v1598_v53 = vpop.permute.xlu0 %1597  ;;  %1739 = vrot.lane.b32.xlu1 %v2659_v34, %s2740_s7 }
 0x23c   : > { %v3378_v49 = vsel %vm1834_vm1, %v1812_v3, %v1598_v53 }
 0x23d   : > { %v1476_v44 = vpop.permute.xlu1 %1475  ;;  %1737 = vrot.lane.b32.xlu0 %v1338_v52, %s2740_s7 }
 0x23e   : > { %v1815_v55 = vsel %vm1801_vm0, %v3151_v12, %v1476_v44 }
 0x23f   : > { %v1474_v10 = vpop.permute.xlu0 %1473  ;;  %1743 = vrot.lane.b32.xlu1 %v2662_v54, %s2740_s7  ;;  %v2674_v54 = vpop.f32.mrf.mxu1 }
 0x240   : > { %v1814_v34 = vsel %vm1801_vm0, %v3153_v13, %v1474_v10 }
 0x241   : > { %v1604_v58 = vpop.permute.xlu1 %1603  ;;  %1741 = vrot.lane.b32.xlu0 %v1348_v57, %s2740_s7  ;;  %v1388_v57 = vpop.f32.mrf.mxu1 }
 0x242   : > { %v3386_v11 = vsel %vm1834_vm1, %v1815_v55, %v1604_v58 }
 0x243   : > { %v1602_v4 = vpop.permute.xlu0 %1601  ;;  %1747 = vrot.lane.b32.xlu1 %v2665_v17, %s2740_s7  ;;  %v2677_v6 = vpop.f32.mrf.mxu1 }
 0x244   : > { %v3392_v52 = vsel %vm1834_vm1, %v1814_v34, %v1602_v4 }
 0x245   : > { %v1480_v5 = vpop.permute.xlu1 %1479  ;;  %1745 = vrot.lane.b32.xlu0 %v1358_v27, %s2740_s7  ;;  %v1398_v7 = vpop.f32.mrf.mxu1 }
 0x246   : > { %v1817_v62 = vsel %vm1801_vm0, %v3155_v14, %v1480_v5 }
 0x247   : > { %v1478_v12 = vpop.permute.xlu0 %1477  ;;  %1751 = vrot.lane.b32.xlu1 %v2668_v40, %s2740_s7  ;;  %v2680_v8 = vpop.f32.mrf.mxu1 }
 0x248   : > { %v1816_v63 = vsel %vm1801_vm0, %v3157_v15, %v1478_v12 }
 0x249   : > { %v1608_v0 = vpop.permute.xlu1 %1607  ;;  %1749 = vrot.lane.b32.xlu0 %v1368_v43, %s2740_s7  ;;  %v1408_v2 = vpop.f32.mrf.mxu1 }
 0x24a   : > { %v3400_v13 = vsel %vm1834_vm1, %v1817_v62, %v1608_v0 }
 0x24b   : > { %v1606_v17 = vpop.permute.xlu0 %1605  ;;  %1755 = vrot.lane.b32.xlu1 %v2671_v60, %s2740_s7 }
 0x24c   : > { %v3406_v1 = vsel %vm1834_vm1, %v1816_v63, %v1606_v17 }
 0x24d   : > { %v1484_v27 = vpop.permute.xlu1 %1483  ;;  %1753 = vrot.lane.b32.xlu0 %v1378_v18, %s2740_s7 }
 0x24e   : > { %v1819_v29 = vsel %vm1801_vm0, %v3159_v16, %v1484_v27 }
 0x24f   : > { %v1482_v14 = vpop.permute.xlu0 %1481  ;;  %1759 = vrot.lane.b32.xlu1 %v2674_v54, %s2740_s7 }
 0x250   : > { %v1818_v48 = vsel %vm1801_vm0, %v3162_v19, %v1482_v14 }
 0x251   : > { %v1612_v33 = vpop.permute.xlu1 %1611  ;;  %1757 = vrot.lane.b32.xlu0 %v1388_v57, %s2740_s7 }
 0x252   : > { %v3414_v15 = vsel %vm1834_vm1, %v1819_v29, %v1612_v33 }
 0x253   : > { %v1610_v40 = vpop.permute.xlu0 %1609  ;;  %1763 = vrot.lane.b32.xlu1 %v2677_v6, %s2740_s7 }
 0x254   : > { %v3420_v38 = vsel %vm1834_vm1, %v1818_v48, %v1610_v40 }
 0x255   : > { %v1488_v43 = vpop.permute.xlu1 %1487  ;;  %1761 = vrot.lane.b32.xlu0 %v1398_v7, %s2740_s7 }
 0x256   : > { %v1821_v9 = vsel %vm1801_vm0, %v3165_v20, %v1488_v43 }
 0x257   : > { %v1486_v16 = vpop.permute.xlu0 %1485  ;;  %1767 = vrot.lane.b32.xlu1 %v2680_v8, %s2740_s7 }
 0x258   : > { %v1820_v53 = vsel %vm1801_vm0, %v3167_v21, %v1486_v16 }
 0x259   : > { %v1616_v3 = vpop.permute.xlu1 %1615  ;;  %1765 = vrot.lane.b32.xlu0 %v1408_v2, %s2740_s7 }
 0x25a   : > { %v3428_v19 = vsel %vm1834_vm1, %v1821_v9, %v1616_v3 }
 0x25b   : > { %v1614_v60 = vpop.permute.xlu0 %1613 }
 0x25c   : > { %v3433_v44 = vsel %vm1834_vm1, %v1820_v53, %v1614_v60 }
 0x25d   : > { %v1492_v10 = vpop.permute.xlu1 %1491 }
 0x25e   : > { %v1823_v55 = vsel %vm1801_vm0, %v3169_v22, %v1492_v10 }
 0x25f   : > { %v1490_v18 = vpop.permute.xlu0 %1489 }
 0x260   : > { %v1822_v34 = vsel %vm1801_vm0, %v3171_v23, %v1490_v18 }
 0x261   : > { %v1620_v58 = vpop.permute.xlu1 %1619 }
 0x262   : > { %v3438_v20 = vsel %vm1834_vm1, %v1823_v55, %v1620_v58 }
 0x263   : > { %v1618_v4 = vpop.permute.xlu0 %1617 }
 0x264   : > { %v3443_v54 = vsel %vm1834_vm1, %v1822_v34, %v1618_v4 }
 0x265   : > { %v1496_v21 = vpop.permute.xlu1 %1495 }
 0x266   : > { %v1825_v12 = vsel %vm1801_vm0, %v3173_v24, %v1496_v21 }
 0x267   : > { %v1494_v5 = vpop.permute.xlu0 %1493 }
 0x268   : > { %v1824_v22 = vsel %vm1801_vm0, %v3175_v25, %v1494_v5 }
 0x269   : > { %v1624_v57 = vpop.permute.xlu1 %1623 }
 0x26a   : > { %v3448_v62 = vsel %vm1834_vm1, %v1825_v12, %v1624_v57 }
 0x26b   : > { %v1622_v0 = vpop.permute.xlu0 %1621 }
 0x26c   : > { %v3453_v63 = vsel %vm1834_vm1, %v1824_v22, %v1622_v0 }
 0x26d   : > { %v1500_v23 = vpop.permute.xlu1 %1499 }
 0x26e   : > { %v1827_v6 = vsel %vm1801_vm0, %v3177_v26, %v1500_v23 }
 0x26f   : > { %v1498_v17 = vpop.permute.xlu0 %1497 }
 0x270   : > { %v1826_v24 = vsel %vm1801_vm0, %v3179_v28, %v1498_v17 }
 0x271   : > { %v1628_v27 = vpop.permute.xlu1 %1627 }
 0x272   : > { %v3458_v14 = vsel %vm1834_vm1, %v1827_v6, %v1628_v27 }
 0x273   : > { %v1626_v7 = vpop.permute.xlu0 %1625 }
 0x274   : > { %v3463_v29 = vsel %vm1834_vm1, %v1826_v24, %v1626_v7 }
 0x275   : > { %v1504_v25 = vpop.permute.xlu1 %1503 }
 0x276   : > { %v1829_v48 = vsel %vm1801_vm0, %v3181_v30, %v1504_v25 }
 0x277   : > { %v1502_v33 = vpop.permute.xlu0 %1501 }
 0x278   : > { %v1828_v26 = vsel %vm1801_vm0, %v3183_v32, %v1502_v33 }
 0x279   : > { %v1632_v40 = vpop.permute.xlu1 %1631 }
 0x27a   : > { %v3468_v8 = vsel %vm1834_vm1, %v1829_v48, %v1632_v40 }
 0x27b   : > { %v1630_v43 = vpop.permute.xlu0 %1629 }
 0x27c   : > { %v3473_v28 = vsel %vm1834_vm1, %v1828_v26, %v1630_v43 }
 0x27d   : > { %v1508_v16 = vpop.permute.xlu1 %1507 }
 0x27e   : > { %v1831_v9 = vsel %vm1801_vm0, %v3185_v35, %v1508_v16  ;;  %v3497_v35 = vld [vmem:[%s3683_s2] ss:$0 sm:$0xff] }
 0x27f   : > { %v1506_v2 = vpop.permute.xlu0 %1505 }
 0x280   : > { %v1830_v53 = vsel %vm1801_vm0, %v3187_v37, %v1506_v2 }
 0x281   : > { %v1636_v3 = vpop.permute.xlu1 %1635 }
 0x282   : > { %v3478_v30 = vsel %vm1834_vm1, %v1831_v9, %v1636_v3 }
 0x283   : > { %v1634_v60 = vpop.permute.xlu0 %1633 }
 0x284   : > { %v3483_v10 = vsel %vm1834_vm1, %v1830_v53, %v1634_v60 }
 0x285   : > { %v3485_v32 = vpop.permute.xlu1 %1511 }
 0x287   : > { %v3487_v18 = vpop.permute.xlu0 %1509 }
 0x289   : > { %v3489_v55 = vpop.permute.xlu1 %1639 }
 0x28b   : > { %v3491_v58 = vpop.permute.xlu0 %1637 }
 0x28d   : > { %v1708_v37 = vpop.permute.xlu1 %1707 }
 0x28e   : > { %v1869_v34 = vsel %vm1867_vm2, %v3286_v41, %v1708_v37 }
 0x28f   : > { %v1908_v4 = vadd.f32 %v3497_v35, %v1869_v34  ;;  %v1706_v21 = vpop.permute.xlu0 %1705 }
 0x290   : > { %v1868_v5 = vsel %vm1867_vm2, %v3293_v56, %v1706_v21 }
 0x291   : > { %1941 = vst.msk [vmem:[%s3502_s17 + $0x8] sm:$0xff] %vm1939_vm3, %v1908_v4  ;;  %v1907_v12 = vadd.f32 %v3497_v35, %v1868_v5  ;;  %v1712_v57 = vpop.permute.xlu1 %1711 }
 0x292   : > { %v1871_v22 = vsel %vm1867_vm2, %v3302_v45, %v1712_v57 }
 0x293   : > { %1940 = vst.msk [vmem:[%s3502_s17] sm:$0xff] %vm1939_vm3, %v1907_v12  ;;  %v1910_v41 = vadd.f32 %v3497_v35, %v1871_v22  ;;  %v1710_v0 = vpop.permute.xlu0 %1709 }
 0x294   : > { %v1870_v23 = vsel %vm1867_vm2, %v3309_v47, %v1710_v0 }
 0x295   : > { %1943 = vst.msk [vmem:[%s3502_s17 + $0x18] sm:$0xff] %vm1939_vm3, %v1910_v41  ;;  %v1909_v56 = vadd.f32 %v3497_v35, %v1870_v23  ;;  %v1716_v17 = vpop.permute.xlu1 %1715 }
 0x296   : > { %v1873_v6 = vsel %vm1867_vm2, %v3320_v50, %v1716_v17 }
 0x297   : > { %1942 = vst.msk [vmem:[%s3502_s17 + $0x10] sm:$0xff] %vm1939_vm3, %v1909_v56  ;;  %v1912_v45 = vadd.f32 %v3497_v35, %v1873_v6  ;;  %v1714_v27 = vpop.permute.xlu0 %1713 }
 0x298   : > { %v1872_v24 = vsel %vm1867_vm2, %v3327_v51, %v1714_v27 }
 0x299   : > { %1945 = vst.msk [vmem:[%s3502_s17 + $0x28] sm:$0xff] %vm1939_vm3, %v1912_v45  ;;  %v1911_v47 = vadd.f32 %v3497_v35, %v1872_v24  ;;  %v1720_v7 = vpop.permute.xlu1 %1719 }
 0x29a   : > { %v1875_v25 = vsel %vm1867_vm2, %v3338_v59, %v1720_v7 }
 0x29b   : > { %1944 = vst.msk [vmem:[%s3502_s17 + $0x20] sm:$0xff] %vm1939_vm3, %v1911_v47  ;;  %v1914_v50 = vadd.f32 %v3497_v35, %v1875_v25  ;;  %v1718_v33 = vpop.permute.xlu0 %1717 }
 0x29c   : > { %v1874_v48 = vsel %vm1867_vm2, %v3345_v61, %v1718_v33 }
 0x29d   : > { %1947 = vst.msk [vmem:[%s3502_s17 + $0x38] sm:$0xff] %vm1939_vm3, %v1914_v50  ;;  %v1913_v51 = vadd.f32 %v3497_v35, %v1874_v48  ;;  %v1724_v40 = vpop.permute.xlu1 %1723 }
 0x29e   : > { %v1877_v26 = vsel %vm1867_vm2, %v3356_v31, %v1724_v40 }
 0x29f   : > { %1946 = vst.msk [vmem:[%s3502_s17 + $0x30] sm:$0xff] %vm1939_vm3, %v1913_v51  ;;  %v1916_v59 = vadd.f32 %v3497_v35, %v1877_v26  ;;  %v1722_v43 = vpop.permute.xlu0 %1721 }
 0x2a0   : > { %v1876_v16 = vsel %vm1867_vm2, %v3363_v36, %v1722_v43 }
 0x2a1   : > { %1949 = vst.msk [vmem:[%s3502_s17 + $0x48] sm:$0xff] %vm1939_vm3, %v1916_v59  ;;  %v1915_v61 = vadd.f32 %v3497_v35, %v1876_v16  ;;  %v1728_v2 = vpop.permute.xlu1 %1727 }
 0x2a2   : > { %v1879_v9 = vsel %vm1867_vm2, %v3372_v46, %v1728_v2 }
 0x2a3   : > { %1948 = vst.msk [vmem:[%s3502_s17 + $0x40] sm:$0xff] %vm1939_vm3, %v1915_v61  ;;  %v1918_v31 = vadd.f32 %v3497_v35, %v1879_v9  ;;  %v1726_v3 = vpop.permute.xlu0 %1725 }
 0x2a4   : > { %v1878_v53 = vsel %vm1867_vm2, %v3378_v49, %v1726_v3 }
 0x2a5   : > { %1951 = vst.msk [vmem:[%s3502_s17 + $0x58] sm:$0xff] %vm1939_vm3, %v1918_v31  ;;  %v1917_v36 = vadd.f32 %v3497_v35, %v1878_v53  ;;  %v1732_v60 = vpop.permute.xlu1 %1731 }
 0x2a6   : > { %v1881_v37 = vsel %vm1867_vm2, %v3386_v11, %v1732_v60 }
 0x2a7   : > { %1950 = vst.msk [vmem:[%s3502_s17 + $0x50] sm:$0xff] %vm1939_vm3, %v1917_v36  ;;  %v1920_v46 = vadd.f32 %v3497_v35, %v1881_v37  ;;  %v1730_v34 = vpop.permute.xlu0 %1729  ;;  %v1832_v37 = vsel %vm1801_vm0, %v3191_v42, %v3487_v18 }
 0x2a8   : > { %v1880_v4 = vsel %vm1867_vm2, %v3392_v52, %v1730_v34 }
 0x2a9   : > { %1953 = vst.msk [vmem:[%s3502_s17 + $0x68] sm:$0xff] %vm1939_vm3, %v1920_v46  ;;  %v1919_v49 = vadd.f32 %v3497_v35, %v1880_v4  ;;  %v1736_v21 = vpop.permute.xlu1 %1735 }
 0x2aa   : > { %v1883_v5 = vsel %vm1867_vm2, %v3400_v13, %v1736_v21 }
 0x2ab   : > { %1952 = vst.msk [vmem:[%s3502_s17 + $0x60] sm:$0xff] %vm1939_vm3, %v1919_v49  ;;  %v1922_v11 = vadd.f32 %v3497_v35, %v1883_v5  ;;  %v1734_v12 = vpop.permute.xlu0 %1733 }
 0x2ac   : > { %v1882_v57 = vsel %vm1867_vm2, %v3406_v1, %v1734_v12 }
 0x2ad   : > { %1955 = vst.msk [vmem:[%s3502_s17 + $0x78] sm:$0xff] %vm1939_vm3, %v1922_v11  ;;  %v1921_v52 = vadd.f32 %v3497_v35, %v1882_v57  ;;  %v1740_v22 = vpop.permute.xlu1 %1739 }
 0x2ae   : > { %v1885_v41 = vsel %vm1867_vm2, %v3414_v15, %v1740_v22 }
 0x2af   : > { %1954 = vst.msk [vmem:[%s3502_s17 + $0x70] sm:$0xff] %vm1939_vm3, %v1921_v52  ;;  %v1924_v13 = vadd.f32 %v3497_v35, %v1885_v41  ;;  %v1738_v0 = vpop.permute.xlu0 %1737 }
 0x2b0   : > { %v1884_v23 = vsel %vm1867_vm2, %v3420_v38, %v1738_v0 }
 0x2b1   : > { %1957 = vst.msk [vmem:[%s3502_s17 + $0x88] sm:$0xff] %vm1939_vm3, %v1924_v13  ;;  %v1923_v1 = vadd.f32 %v3497_v35, %v1884_v23  ;;  %v1744_v56 = vpop.permute.xlu1 %1743 }
 0x2b2   : > { %v1887_v17 = vsel %vm1867_vm2, %v3428_v19, %v1744_v56 }
 0x2b3   : > { %1956 = vst.msk [vmem:[%s3502_s17 + $0x80] sm:$0xff] %vm1939_vm3, %v1923_v1  ;;  %v1926_v15 = vadd.f32 %v3497_v35, %v1887_v17  ;;  %v1742_v6 = vpop.permute.xlu0 %1741 }
 0x2b4   : > { %v1886_v45 = vsel %vm1867_vm2, %v3433_v44, %v1742_v6 }
 0x2b5   : > { %1959 = vst.msk [vmem:[%s3502_s17 + $0x98] sm:$0xff] %vm1939_vm3, %v1926_v15  ;;  %v1925_v38 = vadd.f32 %v3497_v35, %v1886_v45  ;;  %v1748_v27 = vpop.permute.xlu1 %1747 }
 0x2b6   : > { %v1889_v24 = vsel %vm1867_vm2, %v3438_v20, %v1748_v27 }
 0x2b7   : > { %1958 = vst.msk [vmem:[%s3502_s17 + $0x90] sm:$0xff] %vm1939_vm3, %v1925_v38  ;;  %v1928_v19 = vadd.f32 %v3497_v35, %v1889_v24  ;;  %v1746_v47 = vpop.permute.xlu0 %1745 }
 0x2b8   : > { %v1888_v7 = vsel %vm1867_vm2, %v3443_v54, %v1746_v47 }
 0x2b9   : > { %1961 = vst.msk [vmem:[%s3502_s17 + $0xa8] sm:$0xff] %vm1939_vm3, %v1928_v19  ;;  %v1927_v44 = vadd.f32 %v3497_v35, %v1888_v7  ;;  %v1752_v25 = vpop.permute.xlu1 %1751 }
 0x2ba   : > { %v1891_v50 = vsel %vm1867_vm2, %v3448_v62, %v1752_v25 }
 0x2bb   : > { %1960 = vst.msk [vmem:[%s3502_s17 + $0xa0] sm:$0xff] %vm1939_vm3, %v1927_v44  ;;  %v1930_v20 = vadd.f32 %v3497_v35, %v1891_v50  ;;  %v1750_v33 = vpop.permute.xlu0 %1749 }
 0x2bc   : > { %v1890_v48 = vsel %vm1867_vm2, %v3453_v63, %v1750_v33 }
 0x2bd   : > { %1963 = vst.msk [vmem:[%s3502_s17 + $0xb8] sm:$0xff] %vm1939_vm3, %v1930_v20  ;;  %v1929_v54 = vadd.f32 %v3497_v35, %v1890_v48  ;;  %v1756_v51 = vpop.permute.xlu1 %1755 }
 0x2be   : > { %v1893_v40 = vsel %vm1867_vm2, %v3458_v14, %v1756_v51 }
 0x2bf   : > { %1962 = vst.msk [vmem:[%s3502_s17 + $0xb0] sm:$0xff] %vm1939_vm3, %v1929_v54  ;;  %v1932_v62 = vadd.f32 %v3497_v35, %v1893_v40  ;;  %v1754_v26 = vpop.permute.xlu0 %1753 }
 0x2c0   : > { %v1892_v59 = vsel %vm1867_vm2, %v3463_v29, %v1754_v26 }
 0x2c1   : > { %1965 = vst.msk [vmem:[%s3502_s17 + $0xc8] sm:$0xff] %vm1939_vm3, %v1932_v62  ;;  %v1931_v63 = vadd.f32 %v3497_v35, %v1892_v59  ;;  %v1760_v43 = vpop.permute.xlu1 %1759 }
 0x2c2   : > { %v1895_v16 = vsel %vm1867_vm2, %v3468_v8, %v1760_v43 }
 0x2c3   : > { %1964 = vst.msk [vmem:[%s3502_s17 + $0xc0] sm:$0xff] %vm1939_vm3, %v1931_v63  ;;  %v1934_v14 = vadd.f32 %v3497_v35, %v1895_v16  ;;  %v1758_v61 = vpop.permute.xlu0 %1757 }
 0x2c4   : > { %v1894_v2 = vsel %vm1867_vm2, %v3473_v28, %v1758_v61  ;;  %v1833_v28 = vsel %vm1801_vm0, %v3189_v39, %v3485_v32  ;;  %v1865_v39 = vsel %vm1834_vm1, %v1832_v37, %v3491_v58 }
 0x2c5   : > { %1967 = vst.msk [vmem:[%s3502_s17 + $0xd8] sm:$0xff] %vm1939_vm3, %v1934_v14  ;;  %v1933_v29 = vadd.f32 %v3497_v35, %v1894_v2  ;;  %v1764_v9 = vpop.permute.xlu1 %1763  ;;  %v1866_v36 = vsel %vm1834_vm1, %v1833_v28, %v3489_v55 }
 0x2c6   : > { %v1897_v31 = vsel %vm1867_vm2, %v3478_v30, %v1764_v9 }
 0x2c7   : > { %1966 = vst.msk [vmem:[%s3502_s17 + $0xd0] sm:$0xff] %vm1939_vm3, %v1933_v29  ;;  %v1936_v8 = vadd.f32 %v3497_v35, %v1897_v31  ;;  %v1762_v3 = vpop.permute.xlu0 %1761 }
 0x2c8   : > { %v1896_v53 = vsel %vm1867_vm2, %v3483_v10, %v1762_v3 }
 0x2c9   : > { %1969 = vst.msk [vmem:[%s3502_s17 + $0xe8] sm:$0xff] %vm1939_vm3, %v1936_v8  ;;  %v1935_v30 = vadd.f32 %v3497_v35, %v1896_v53  ;;  %v1768_v60 = vpop.permute.xlu1 %1767 }
 0x2ca   : > { %v1899_v46 = vsel %vm1867_vm2, %v1866_v36, %v1768_v60 }
 0x2cb   : > { %1968 = vst.msk [vmem:[%s3502_s17 + $0xe0] sm:$0xff] %vm1939_vm3, %v1935_v30  ;;  %v1938_v10 = vadd.f32 %v3497_v35, %v1899_v46  ;;  %v1766_v32 = vpop.permute.xlu0 %1765 }
 0x2cc   : > { %v1898_v55 = vsel %vm1867_vm2, %v1865_v39, %v1766_v32 }
 0x2cd   : > { %1971 = vst.msk [vmem:[%s3502_s17 + $0xf8] sm:$0xff] %vm1939_vm3, %v1938_v10  ;;  %v1937_v34 = vadd.f32 %v3497_v35, %v1898_v55 }
 0x2cf   : > { %1970 = vst.msk [vmem:[%s3502_s17 + $0xf0] sm:$0xff] %vm1939_vm3, %v1937_v34 }
 0x2d0 PF: > { %s13_s14 = sadd.s32 1, %s2733_s14   ;;  %s3685_s12 = smov %s2729_s13 }
 0x2d1   : > { %p10_p5 = scmp.ge.s32.totalorder %s13_s14, 4   ;;  %s3686_s13 = smov %s3688_s15 }
 0x2d3   :  { %12 = sbr.rel (!%p10_p5) target bundleno = 2 (0x2), region = 65 }

</bundles_post_ra>
